<compile_context>
chip_gen: v6e
topology: v6e:2x2x1
jax: 0.10.0
libtpu: 0.0.40
codegen_flags: <defaults>
</compile_context>

<pallas_src>
import functools

import jax
import jax.numpy as jnp
from jax import lax
from jax.experimental import pallas as pl
from jax.experimental.pallas import tpu as pltpu


def _ppsa_kernel(x_ref,
                 wv_ch_ref, bv_ch_ref, wq_ch_ref, bq_ch_ref,
                 wz_ref, bz_ref, gamma_ref, beta_ref,
                 wv_sp_ref, bv_sp_ref, wq_sp_ref, bq_sp_ref,
                 o_ref, *, hw_true):
    """One block of `bt` images per grid step. x_ref block: (bt, C, HWp)."""
    f32 = jnp.float32
    bt, c, hwp = x_ref.shape
    xdt = x_ref.dtype
    padded = hwp != hw_true

    # Small weights / biases: load once per grid step, keep scalars in f32.
    wv_ch = wv_ch_ref[...]                      # (C/2, C)
    bv_ch = bv_ch_ref[...].astype(f32)          # (C/2, 1)
    wq_ch = wq_ch_ref[...].astype(f32)          # (1, C)
    bq_ch = bq_ch_ref[...].astype(f32)          # (1, 1)
    wz = wz_ref[...]                            # (C, C/2)
    bz = bz_ref[...].astype(f32)                # (C, 1)
    gamma = gamma_ref[...].astype(f32)          # (C, 1)
    beta = beta_ref[...].astype(f32)            # (C, 1)
    wv_sp = wv_sp_ref[...].astype(f32)          # (C/2, C)
    bv_sp = bv_sp_ref[...].astype(f32)          # (C/2, 1)
    wq_sp = wq_sp_ref[...]                      # (C/2, C)
    bq_sp = bq_sp_ref[...].astype(f32)          # (C/2, 1)

    ones_col = jnp.ones((hwp, 1), xdt)          # MXU ones-column for the spatial mean
    if padded:
        lane = lax.broadcasted_iota(jnp.int32, (1, hwp), 1)
        valid = lane < hw_true                  # (1, HWp) mask for the HW softmax
    inv_hw = 1.0 / float(hw_true)

    # Static unroll over the images packed into this block (bt is usually 1).
    for ib in range(bt):
        x = x_ref[ib]                           # (C, HWp), storage dtype — no upcast

        # ---- spatial query: AdaptiveAvgPool2d(1) of a 1x1 conv == 1x1 conv of mean ----
        # zero padding contributes 0 to the sum; divide by the true HW.
        x_mean = jnp.dot(x, ones_col, preferred_element_type=f32) * inv_hw      # (C, 1)
        qs = jnp.dot(wq_sp, x_mean, preferred_element_type=f32) + bq_sp         # (C/2, 1)
        qs = qs - jnp.max(qs, axis=0, keepdims=True)
        qs = jnp.exp(qs)
        qs = qs / jnp.sum(qs, axis=0, keepdims=True)        # softmax over channels

        # Spatial value path collapsed: sum_k q_s[k]*(Wv_sp x + b)[k,:] == (q_s^T Wv_sp) x + q_s^T b
        v = lax.dot_general(qs, wv_sp, (((0,), (0,)), ((), ())),
                            preferred_element_type=f32)                          # (1, C)
        sp_bias = jnp.sum(qs * bv_sp, axis=0, keepdims=True)                     # (1, 1)

        # ---- single stacked (2,C)@(C,HWp) pass over x ----
        lhs = jnp.concatenate([wq_ch, v], axis=0).astype(xdt)                    # (2, C)
        m = jnp.dot(lhs, x, preferred_element_type=f32)                          # (2, HWp)
        q_logits = m[0:1, :] + bq_ch                                             # (1, HWp)
        sw = m[1:2, :] + sp_bias                                                 # (1, HWp)

        # channel-branch softmax over spatial positions (lane axis), pad-masked
        if padded:
            q_logits = jnp.where(valid, q_logits, -jnp.inf)
        q_logits = q_logits - jnp.max(q_logits, axis=-1, keepdims=True)
        q = jnp.exp(q_logits)
        q = q / jnp.sum(q, axis=-1, keepdims=True)                               # (1, HWp)

        # Channel value path collapsed (softmax weights sum to 1):
        #   sum_hw (Wv_ch x + b) * q == Wv_ch (x q^T) + b
        t = lax.dot_general(x, q.astype(xdt), (((1,), (1,)), ((), ())),
                            preferred_element_type=f32)                          # (C, 1)
        z = jnp.dot(wv_ch, t, preferred_element_type=f32) + bv_ch                # (C/2, 1)
        zc = jnp.dot(wz, z, preferred_element_type=f32) + bz                     # (C, 1)

        # LayerNorm over the channel axis (eps matches nn.LayerNorm) + sigmoid
        mu = jnp.mean(zc, axis=0, keepdims=True)
        var = jnp.mean((zc - mu) * (zc - mu), axis=0, keepdims=True)
        zn = (zc - mu) * lax.rsqrt(var + 1e-5)
        ch_w = jax.nn.sigmoid(zn * gamma + beta)                                 # (C, 1)
        sp_w = jax.nn.sigmoid(sw)                                                # (1, HWp)

        # out = channel_weight*x + spatial_weight*x == x * (ch_w + sp_w)
        o_ref[ib] = (x * (ch_w.astype(xdt) + sp_w.astype(xdt))).astype(o_ref.dtype)


def _pick_block_batch(b, per_image_bytes):
    """Pack several images per grid step when the per-image block is tiny, but keep
    >= 2 grid steps when b >= 2 so both TensorCores (v7x) get work."""
    target = 2 << 20  # ~2 MiB x-block target
    bt = max(1, min(b, target // max(per_image_bytes, 1)))
    if b >= 2:
        bt = max(1, min(bt, b // 2))
    while b % bt:
        bt -= 1
    return bt


def parallel_polarized_self_attention(x, params):
    """x: (B, C, H, W) NCHW; params: dict of 2D weights (Cout, Cin) and (Cout, 1) biases."""
    b, c, h, w = x.shape
    hw = h * w
    hwp = ((hw + 127) // 128) * 128            # lane-dense last dim
    x3 = x.reshape(b, c, hw)                   # free reshape: HW on lanes, no HBM transpose
    if hwp != hw:
        x3 = jnp.pad(x3, ((0, 0), (0, 0), (0, hwp - hw)))

    itemsize = x3.dtype.itemsize
    bt = _pick_block_batch(b, c * hwp * itemsize)
    grid = b // bt

    weight_keys = ("wv_ch", "bv_ch", "wq_ch", "bq_ch", "wz", "bz",
                   "gamma", "beta", "wv_sp", "bv_sp", "wq_sp", "bq_sp")
    weights = [params[k] for k in weight_keys]

    # Explicit VMEM budget: double-buffered x/out blocks + weights + headroom,
    # clamped to v7x's 64 MiB per-TC VMEM.
    block_bytes = bt * c * hwp * itemsize
    weight_bytes = sum(int(wt.size) * wt.dtype.itemsize for wt in weights)
    vmem_limit = 2 * 2 * block_bytes + weight_bytes + (4 << 20)
    vmem_limit = int(max(32 << 20, min(vmem_limit, 64 << 20)))

    kernel = functools.partial(_ppsa_kernel, hw_true=hw)

    def _w(shape):
        # Constant block index -> Pallas keeps the same weight tile resident.
        return pl.BlockSpec(shape, lambda i: (0, 0))

    out3 = pl.pallas_call(
        kernel,
        out_shape=jax.ShapeDtypeStruct((b, c, hwp), x.dtype),
        grid_spec=pltpu.PrefetchScalarGridSpec(
            num_scalar_prefetch=0,
            grid=(grid,),
            in_specs=[pl.BlockSpec((bt, c, hwp), lambda i: (i, 0, 0))]
                     + [_w(tuple(wt.shape)) for wt in weights],
            out_specs=pl.BlockSpec((bt, c, hwp), lambda i: (i, 0, 0)),
        ),
        compiler_params=pltpu.CompilerParams(
            dimension_semantics=("parallel",),   # batch blocks are independent
            vmem_limit_bytes=vmem_limit,
        ),
    )(x3, *weights)

    if hwp != hw:
        out3 = out3[:, :, :hw]
    return out3.reshape(b, c, h, w)


def _reference(x, p):
    """Faithful JAX port of the PyTorch forward (pool applied after the 1x1 conv)."""
    b, c, h, w = x.shape
    c2 = c // 2
    hw = h * w

    def conv1x1(inp, wt, bias):
        return jnp.einsum("oc,bchw->bohw", wt, inp) + bias.reshape(1, -1, 1, 1)

    channel_wv = conv1x1(x, p["wv_ch"], p["bv_ch"]).reshape(b, c2, hw)
    channel_wq = conv1x1(x, p["wq_ch"], p["bq_ch"]).reshape(b, hw, 1)
    channel_wq = jax.nn.softmax(channel_wq, axis=1)
    channel_wz = jnp.matmul(channel_wv, channel_wq)[..., None]                      # (b, c/2, 1, 1)
    zc = conv1x1(channel_wz, p["wz"], p["bz"]).reshape(b, c, 1).transpose(0, 2, 1)  # (b, 1, c)
    mu = jnp.mean(zc, axis=-1, keepdims=True)
    var = jnp.mean((zc - mu) ** 2, axis=-1, keepdims=True)
    zn = (zc - mu) / jnp.sqrt(var + 1e-5)
    zn = zn * p["gamma"].reshape(1, 1, c) + p["beta"].reshape(1, 1, c)
    channel_weight = jax.nn.sigmoid(zn).transpose(0, 2, 1).reshape(b, c, 1, 1)
    channel_out = channel_weight * x

    spatial_wv = conv1x1(x, p["wv_sp"], p["bv_sp"]).reshape(b, c2, hw)
    spatial_wq = conv1x1(x, p["wq_sp"], p["bq_sp"])
    spatial_wq = jnp.mean(spatial_wq, axis=(2, 3)).reshape(b, 1, c2)
    spatial_wq = jax.nn.softmax(spatial_wq, axis=-1)
    spatial_wz = jnp.matmul(spatial_wq, spatial_wv)                                  # (b, 1, hw)
    spatial_weight = jax.nn.sigmoid(spatial_wz.reshape(b, 1, h, w))
    spatial_out = spatial_weight * x
    return spatial_out + channel_out


if __name__ == "__main__":
    key = jax.random.PRNGKey(0)
    b, c, h, w = 2, 128, 16, 16
    c2 = c // 2
    keys = jax.random.split(key, 13)

    x = jax.random.normal(keys[0], (b, c, h, w), dtype=jnp.float32)

    def scale(fan_in):
        return 1.0 / jnp.sqrt(jnp.float32(fan_in))

    params = {
        "wv_ch": jax.random.normal(keys[1], (c2, c), jnp.float32) * scale(c),
        "bv_ch": jax.random.normal(keys[2], (c2, 1), jnp.float32) * 0.1,
        "wq_ch": jax.random.normal(keys[3], (1, c), jnp.float32) * scale(c),
        "bq_ch": jax.random.normal(keys[4], (1, 1), jnp.float32) * 0.1,
        "wz":    jax.random.normal(keys[5], (c, c2), jnp.float32) * scale(c2),
        "bz":    jax.random.normal(keys[6], (c, 1), jnp.float32) * 0.1,
        "gamma": 1.0 + 0.1 * jax.random.normal(keys[7], (c, 1), jnp.float32),
        "beta":  0.1 * jax.random.normal(keys[8], (c, 1), jnp.float32),
        "wv_sp": jax.random.normal(keys[9], (c2, c), jnp.float32) * scale(c),
        "bv_sp": jax.random.normal(keys[10], (c2, 1), jnp.float32) * 0.1,
        "wq_sp": jax.random.normal(keys[11], (c2, c), jnp.float32) * scale(c),
        "bq_sp": jax.random.normal(keys[12], (c2, 1), jnp.float32) * 0.1,
    }

    y = parallel_polarized_self_attention(x, params)
    jax.block_until_ready(y)

    ref = _reference(x, params)
    assert y.shape == x.shape
    max_err = float(jnp.max(jnp.abs(y - ref)))
    assert jnp.allclose(y, ref, atol=5e-4, rtol=5e-4), f"mismatch vs reference: max abs err {max_err}"

    print("KERNEL_OK")
</pallas_src>

<mosaic_0001>
module attributes {stable_mosaic.version = 11 : i64} {
  func.func @_ppsa_kernel(%arg0: i32, %arg1: memref<1x128x256xf32, #tpu.memory_space<vmem>>, %arg2: memref<64x128xf32, #tpu.memory_space<vmem>>, %arg3: memref<64x1xf32, #tpu.memory_space<vmem>>, %arg4: memref<1x128xf32, #tpu.memory_space<vmem>>, %arg5: memref<1x1xf32, #tpu.memory_space<vmem>>, %arg6: memref<128x64xf32, #tpu.memory_space<vmem>>, %arg7: memref<128x1xf32, #tpu.memory_space<vmem>>, %arg8: memref<128x1xf32, #tpu.memory_space<vmem>>, %arg9: memref<128x1xf32, #tpu.memory_space<vmem>>, %arg10: memref<64x128xf32, #tpu.memory_space<vmem>>, %arg11: memref<64x1xf32, #tpu.memory_space<vmem>>, %arg12: memref<64x128xf32, #tpu.memory_space<vmem>>, %arg13: memref<64x1xf32, #tpu.memory_space<vmem>>, %arg14: memref<1x128x256xf32, #tpu.memory_space<vmem>>) attributes {dimension_semantics = [#tpu.dimension_semantics<parallel>], iteration_bounds = array<i64: 2>, scalar_prefetch = 0 : i64, scratch_operands = 0 : i64, tpu.core_type = #tpu.core_type<tc>, window_params = [{transform_indices = @transform_0, window_bounds = array<i64: 1, 128, 256>}, {pipeline_mode = #tpu.pipeline_mode<synchronous>, transform_indices = @transform_1, window_bounds = array<i64: 64, 128>}, {pipeline_mode = #tpu.pipeline_mode<synchronous>, transform_indices = @transform_2, window_bounds = array<i64: 64, 1>}, {pipeline_mode = #tpu.pipeline_mode<synchronous>, transform_indices = @transform_3, window_bounds = array<i64: 1, 128>}, {pipeline_mode = #tpu.pipeline_mode<synchronous>, transform_indices = @transform_4, window_bounds = array<i64: 1, 1>}, {pipeline_mode = #tpu.pipeline_mode<synchronous>, transform_indices = @transform_5, window_bounds = array<i64: 128, 64>}, {pipeline_mode = #tpu.pipeline_mode<synchronous>, transform_indices = @transform_6, window_bounds = array<i64: 128, 1>}, {pipeline_mode = #tpu.pipeline_mode<synchronous>, transform_indices = @transform_7, window_bounds = array<i64: 128, 1>}, {pipeline_mode = #tpu.pipeline_mode<synchronous>, transform_indices = @transform_8, window_bounds = array<i64: 128, 1>}, {pipeline_mode = #tpu.pipeline_mode<synchronous>, transform_indices = @transform_9, window_bounds = array<i64: 64, 128>}, {pipeline_mode = #tpu.pipeline_mode<synchronous>, transform_indices = @transform_10, window_bounds = array<i64: 64, 1>}, {pipeline_mode = #tpu.pipeline_mode<synchronous>, transform_indices = @transform_11, window_bounds = array<i64: 64, 128>}, {pipeline_mode = #tpu.pipeline_mode<synchronous>, transform_indices = @transform_12, window_bounds = array<i64: 64, 1>}, {transform_indices = @transform_13, window_bounds = array<i64: 1, 128, 256>}]} {
    %c0 = arith.constant 0 : index
    %c0_0 = arith.constant 0 : index
    %0 = vector.load %arg2[%c0, %c0_0] : memref<64x128xf32, #tpu.memory_space<vmem>>, vector<64x128xf32>
    %c0_1 = arith.constant 0 : index
    %c0_2 = arith.constant 0 : index
    %1 = vector.load %arg3[%c0_1, %c0_2] : memref<64x1xf32, #tpu.memory_space<vmem>>, vector<64x1xf32>
    %c0_3 = arith.constant 0 : index
    %c0_4 = arith.constant 0 : index
    %2 = vector.load %arg4[%c0_3, %c0_4] : memref<1x128xf32, #tpu.memory_space<vmem>>, vector<1x128xf32>
    %c0_5 = arith.constant 0 : index
    %c0_6 = arith.constant 0 : index
    %3 = vector.load %arg5[%c0_5, %c0_6] : memref<1x1xf32, #tpu.memory_space<vmem>>, vector<1x1xf32>
    %c0_7 = arith.constant 0 : index
    %c0_8 = arith.constant 0 : index
    %4 = vector.load %arg6[%c0_7, %c0_8] : memref<128x64xf32, #tpu.memory_space<vmem>>, vector<128x64xf32>
    %c0_9 = arith.constant 0 : index
    %c0_10 = arith.constant 0 : index
    %5 = vector.load %arg7[%c0_9, %c0_10] : memref<128x1xf32, #tpu.memory_space<vmem>>, vector<128x1xf32>
    %c0_11 = arith.constant 0 : index
    %c0_12 = arith.constant 0 : index
    %6 = vector.load %arg8[%c0_11, %c0_12] : memref<128x1xf32, #tpu.memory_space<vmem>>, vector<128x1xf32>
    %c0_13 = arith.constant 0 : index
    %c0_14 = arith.constant 0 : index
    %7 = vector.load %arg9[%c0_13, %c0_14] : memref<128x1xf32, #tpu.memory_space<vmem>>, vector<128x1xf32>
    %c0_15 = arith.constant 0 : index
    %c0_16 = arith.constant 0 : index
    %8 = vector.load %arg10[%c0_15, %c0_16] : memref<64x128xf32, #tpu.memory_space<vmem>>, vector<64x128xf32>
    %c0_17 = arith.constant 0 : index
    %c0_18 = arith.constant 0 : index
    %9 = vector.load %arg11[%c0_17, %c0_18] : memref<64x1xf32, #tpu.memory_space<vmem>>, vector<64x1xf32>
    %c0_19 = arith.constant 0 : index
    %c0_20 = arith.constant 0 : index
    %10 = vector.load %arg12[%c0_19, %c0_20] : memref<64x128xf32, #tpu.memory_space<vmem>>, vector<64x128xf32>
    %c0_21 = arith.constant 0 : index
    %c0_22 = arith.constant 0 : index
    %11 = vector.load %arg13[%c0_21, %c0_22] : memref<64x1xf32, #tpu.memory_space<vmem>>, vector<64x1xf32>
    %cst = arith.constant 1.000000e+00 : f32
    %12 = vector.broadcast %cst : f32 to vector<256x1xf32>
    %c0_23 = arith.constant 0 : index
    %c0_24 = arith.constant 0 : index
    %c0_25 = arith.constant 0 : index
    %13 = vector.load %arg1[%c0_23, %c0_24, %c0_25] : memref<1x128x256xf32, #tpu.memory_space<vmem>>, vector<1x128x256xf32>
    %14 = vector.shape_cast %13 : vector<1x128x256xf32> to vector<128x256xf32>
    %cst_26 = arith.constant dense<0.000000e+00> : vector<128x1xf32>
    %15 = tpu.matmul %14, %12, %cst_26 {dimension_numbers = #tpu.dot_dimension_numbers<[1], [0], [0], [1], [0, 0, 1, 1], [], []>} : vector<128x256xf32>, vector<256x1xf32>, vector<128x1xf32> -> vector<128x1xf32>
    %cst_27 = arith.constant 3.906250e-03 : f32
    %16 = vector.broadcast %cst_27 : f32 to vector<128x1xf32>
    %17 = arith.mulf %15, %16 : vector<128x1xf32>
    %cst_28 = arith.constant dense<0.000000e+00> : vector<64x1xf32>
    %18 = tpu.matmul %10, %17, %cst_28 {dimension_numbers = #tpu.dot_dimension_numbers<[1], [0], [0], [1], [0, 0, 1, 1], [], []>} : vector<64x128xf32>, vector<128x1xf32>, vector<64x1xf32> -> vector<64x1xf32>
    %19 = arith.addf %18, %11 : vector<64x1xf32>
    %cst_29 = arith.constant dense<0xFF800000> : vector<1xf32>
    %20 = vector.multi_reduction <maximumf>, %19, %cst_29 [0] : vector<64x1xf32> to vector<1xf32>
    %21 = vector.shape_cast %20 : vector<1xf32> to vector<1x1xf32>
    %22 = vector.broadcast %21 : vector<1x1xf32> to vector<64x1xf32>
    %23 = arith.subf %19, %22 : vector<64x1xf32>
    %24 = math.exp %23 : vector<64x1xf32>
    %cst_30 = arith.constant dense<0.000000e+00> : vector<1xf32>
    %25 = vector.multi_reduction <add>, %24, %cst_30 [0] : vector<64x1xf32> to vector<1xf32>
    %26 = vector.shape_cast %25 : vector<1xf32> to vector<1x1xf32>
    %27 = vector.broadcast %26 : vector<1x1xf32> to vector<64x1xf32>
    %28 = arith.divf %24, %27 : vector<64x1xf32>
    %cst_31 = arith.constant dense<0.000000e+00> : vector<1x128xf32>
    %29 = tpu.matmul %28, %8, %cst_31 {dimension_numbers = #tpu.dot_dimension_numbers<[0], [0], [1], [1], [0, 1, 1, 1], [], []>} : vector<64x1xf32>, vector<64x128xf32>, vector<1x128xf32> -> vector<1x128xf32>
    %30 = arith.mulf %28, %9 : vector<64x1xf32>
    %cst_32 = arith.constant dense<0.000000e+00> : vector<1xf32>
    %31 = vector.multi_reduction <add>, %30, %cst_32 [0] : vector<64x1xf32> to vector<1xf32>
    %32 = vector.shape_cast %31 : vector<1xf32> to vector<1x1xf32>
    %33 = tpu.concatenate %2, %29 in 0 : vector<1x128xf32>, vector<1x128xf32> -> vector<2x128xf32>
    %cst_33 = arith.constant dense<0.000000e+00> : vector<2x256xf32>
    %34 = tpu.matmul %33, %14, %cst_33 {dimension_numbers = #tpu.dot_dimension_numbers<[1], [0], [0], [1], [0, 0, 1, 1], [], []>} : vector<2x128xf32>, vector<128x256xf32>, vector<2x256xf32> -> vector<2x256xf32>
    %35 = vector.extract_strided_slice %34 {offsets = [0, 0], sizes = [1, 256], strides = [1, 1]} : vector<2x256xf32> to vector<1x256xf32>
    %36 = vector.broadcast %3 : vector<1x1xf32> to vector<1x256xf32>
    %37 = arith.addf %35, %36 : vector<1x256xf32>
    %38 = vector.extract_strided_slice %34 {offsets = [1, 0], sizes = [1, 256], strides = [1, 1]} : vector<2x256xf32> to vector<1x256xf32>
    %39 = vector.broadcast %32 : vector<1x1xf32> to vector<1x256xf32>
    %40 = arith.addf %38, %39 : vector<1x256xf32>
    %cst_34 = arith.constant dense<0xFF800000> : vector<1xf32>
    %41 = vector.multi_reduction <maximumf>, %37, %cst_34 [1] : vector<1x256xf32> to vector<1xf32>
    %42 = vector.shape_cast %41 : vector<1xf32> to vector<1x1xf32>
    %43 = vector.broadcast %42 : vector<1x1xf32> to vector<1x256xf32>
    %44 = arith.subf %37, %43 : vector<1x256xf32>
    %45 = math.exp %44 : vector<1x256xf32>
    %cst_35 = arith.constant dense<0.000000e+00> : vector<1xf32>
    %46 = vector.multi_reduction <add>, %45, %cst_35 [1] : vector<1x256xf32> to vector<1xf32>
    %47 = vector.shape_cast %46 : vector<1xf32> to vector<1x1xf32>
    %48 = vector.broadcast %47 : vector<1x1xf32> to vector<1x256xf32>
    %49 = arith.divf %45, %48 : vector<1x256xf32>
    %cst_36 = arith.constant dense<0.000000e+00> : vector<128x1xf32>
    %50 = tpu.matmul %14, %49, %cst_36 {dimension_numbers = #tpu.dot_dimension_numbers<[1], [1], [0], [0], [0, 0, 1, 0], [], []>} : vector<128x256xf32>, vector<1x256xf32>, vector<128x1xf32> -> vector<128x1xf32>
    %cst_37 = arith.constant dense<0.000000e+00> : vector<64x1xf32>
    %51 = tpu.matmul %0, %50, %cst_37 {dimension_numbers = #tpu.dot_dimension_numbers<[1], [0], [0], [1], [0, 0, 1, 1], [], []>} : vector<64x128xf32>, vector<128x1xf32>, vector<64x1xf32> -> vector<64x1xf32>
    %52 = arith.addf %51, %1 : vector<64x1xf32>
    %cst_38 = arith.constant dense<0.000000e+00> : vector<128x1xf32>
    %53 = tpu.matmul %4, %52, %cst_38 {dimension_numbers = #tpu.dot_dimension_numbers<[1], [0], [0], [1], [0, 0, 1, 1], [], []>} : vector<128x64xf32>, vector<64x1xf32>, vector<128x1xf32> -> vector<128x1xf32>
    %54 = arith.addf %53, %5 : vector<128x1xf32>
    %cst_39 = arith.constant dense<0.000000e+00> : vector<1xf32>
    %55 = vector.multi_reduction <add>, %54, %cst_39 [0] : vector<128x1xf32> to vector<1xf32>
    %56 = vector.shape_cast %55 : vector<1xf32> to vector<1x1xf32>
    %cst_40 = arith.constant 1.280000e+02 : f32
    %57 = vector.broadcast %cst_40 : f32 to vector<1x1xf32>
    %58 = arith.divf %56, %57 : vector<1x1xf32>
    %59 = vector.broadcast %58 : vector<1x1xf32> to vector<128x1xf32>
    %60 = arith.subf %54, %59 : vector<128x1xf32>
    %61 = vector.broadcast %58 : vector<1x1xf32> to vector<128x1xf32>
    %62 = arith.subf %54, %61 : vector<128x1xf32>
    %63 = arith.mulf %60, %62 : vector<128x1xf32>
    %cst_41 = arith.constant dense<0.000000e+00> : vector<1xf32>
    %64 = vector.multi_reduction <add>, %63, %cst_41 [0] : vector<128x1xf32> to vector<1xf32>
    %65 = vector.shape_cast %64 : vector<1xf32> to vector<1x1xf32>
    %cst_42 = arith.constant 1.280000e+02 : f32
    %66 = vector.broadcast %cst_42 : f32 to vector<1x1xf32>
    %67 = arith.divf %65, %66 : vector<1x1xf32>
    %68 = vector.broadcast %58 : vector<1x1xf32> to vector<128x1xf32>
    %69 = arith.subf %54, %68 : vector<128x1xf32>
    %cst_43 = arith.constant 9.99999974E-6 : f32
    %70 = vector.broadcast %cst_43 : f32 to vector<1x1xf32>
    %71 = arith.addf %67, %70 : vector<1x1xf32>
    %72 = math.rsqrt %71 : vector<1x1xf32>
    %73 = vector.broadcast %72 : vector<1x1xf32> to vector<128x1xf32>
    %74 = arith.mulf %69, %73 : vector<128x1xf32>
    %75 = arith.mulf %74, %6 : vector<128x1xf32>
    %76 = arith.addf %75, %7 : vector<128x1xf32>
    %77 = arith.negf %76 : vector<128x1xf32>
    %78 = math.exp %77 : vector<128x1xf32>
    %cst_44 = arith.constant 1.000000e+00 : f32
    %79 = vector.broadcast %cst_44 : f32 to vector<128x1xf32>
    %80 = arith.addf %79, %78 : vector<128x1xf32>
    %81 = arith.divf %79, %80 : vector<128x1xf32>
    %82 = arith.negf %40 : vector<1x256xf32>
    %83 = math.exp %82 : vector<1x256xf32>
    %cst_45 = arith.constant 1.000000e+00 : f32
    %84 = vector.broadcast %cst_45 : f32 to vector<1x256xf32>
    %85 = arith.addf %84, %83 : vector<1x256xf32>
    %86 = arith.divf %84, %85 : vector<1x256xf32>
    %87 = vector.broadcast %81 : vector<128x1xf32> to vector<128x256xf32>
    %88 = vector.broadcast %86 : vector<1x256xf32> to vector<128x256xf32>
    %89 = arith.addf %87, %88 : vector<128x256xf32>
    %90 = arith.mulf %14, %89 : vector<128x256xf32>
    %c0_46 = arith.constant 0 : index
    %c0_47 = arith.constant 0 : index
    %c0_48 = arith.constant 0 : index
    %91 = vector.load %arg14[%c0_46, %c0_47, %c0_48] : memref<1x128x256xf32, #tpu.memory_space<vmem>>, vector<1x128x256xf32>
    %92 = vector.shape_cast %91 : vector<1x128x256xf32> to vector<128x256xf32>
    %93 = vector.shape_cast %90 : vector<128x256xf32> to vector<1x128x256xf32>
    tpu.vector_store %arg14[%c0_46, %c0_47, %c0_48], %93 {strides = array<i32>} : memref<1x128x256xf32, #tpu.memory_space<vmem>>, vector<1x128x256xf32>,
    return
  }
  func.func @transform_0(%arg0: i32) -> (i32, i32, i32) {
    %c0_i32 = arith.constant 0 : i32
    %c0_i32_0 = arith.constant 0 : i32
    %c0_i32_1 = arith.constant 0 : i32
    return %arg0, %c0_i32, %c0_i32_0 : i32, i32, i32
  }
  func.func @transform_1(%arg0: i32) -> (i32, i32) {
    %c0_i32 = arith.constant 0 : i32
    %c0_i32_0 = arith.constant 0 : i32
    %c0_i32_1 = arith.constant 0 : i32
    return %c0_i32, %c0_i32_0 : i32, i32
  }
  func.func @transform_2(%arg0: i32) -> (i32, i32) {
    %c0_i32 = arith.constant 0 : i32
    %c0_i32_0 = arith.constant 0 : i32
    %c0_i32_1 = arith.constant 0 : i32
    return %c0_i32, %c0_i32_0 : i32, i32
  }
  func.func @transform_3(%arg0: i32) -> (i32, i32) {
    %c0_i32 = arith.constant 0 : i32
    %c0_i32_0 = arith.constant 0 : i32
    %c0_i32_1 = arith.constant 0 : i32
    return %c0_i32, %c0_i32_0 : i32, i32
  }
  func.func @transform_4(%arg0: i32) -> (i32, i32) {
    %c0_i32 = arith.constant 0 : i32
    %c0_i32_0 = arith.constant 0 : i32
    %c0_i32_1 = arith.constant 0 : i32
    return %c0_i32, %c0_i32_0 : i32, i32
  }
  func.func @transform_5(%arg0: i32) -> (i32, i32) {
    %c0_i32 = arith.constant 0 : i32
    %c0_i32_0 = arith.constant 0 : i32
    %c0_i32_1 = arith.constant 0 : i32
    return %c0_i32, %c0_i32_0 : i32, i32
  }
  func.func @transform_6(%arg0: i32) -> (i32, i32) {
    %c0_i32 = arith.constant 0 : i32
    %c0_i32_0 = arith.constant 0 : i32
    %c0_i32_1 = arith.constant 0 : i32
    return %c0_i32, %c0_i32_0 : i32, i32
  }
  func.func @transform_7(%arg0: i32) -> (i32, i32) {
    %c0_i32 = arith.constant 0 : i32
    %c0_i32_0 = arith.constant 0 : i32
    %c0_i32_1 = arith.constant 0 : i32
    return %c0_i32, %c0_i32_0 : i32, i32
  }
  func.func @transform_8(%arg0: i32) -> (i32, i32) {
    %c0_i32 = arith.constant 0 : i32
    %c0_i32_0 = arith.constant 0 : i32
    %c0_i32_1 = arith.constant 0 : i32
    return %c0_i32, %c0_i32_0 : i32, i32
  }
  func.func @transform_9(%arg0: i32) -> (i32, i32) {
    %c0_i32 = arith.constant 0 : i32
    %c0_i32_0 = arith.constant 0 : i32
    %c0_i32_1 = arith.constant 0 : i32
    return %c0_i32, %c0_i32_0 : i32, i32
  }
  func.func @transform_10(%arg0: i32) -> (i32, i32) {
    %c0_i32 = arith.constant 0 : i32
    %c0_i32_0 = arith.constant 0 : i32
    %c0_i32_1 = arith.constant 0 : i32
    return %c0_i32, %c0_i32_0 : i32, i32
  }
  func.func @transform_11(%arg0: i32) -> (i32, i32) {
    %c0_i32 = arith.constant 0 : i32
    %c0_i32_0 = arith.constant 0 : i32
    %c0_i32_1 = arith.constant 0 : i32
    return %c0_i32, %c0_i32_0 : i32, i32
  }
  func.func @transform_12(%arg0: i32) -> (i32, i32) {
    %c0_i32 = arith.constant 0 : i32
    %c0_i32_0 = arith.constant 0 : i32
    %c0_i32_1 = arith.constant 0 : i32
    return %c0_i32, %c0_i32_0 : i32, i32
  }
  func.func @transform_13(%arg0: i32) -> (i32, i32, i32) {
    %c0_i32 = arith.constant 0 : i32
    %c0_i32_0 = arith.constant 0 : i32
    %c0_i32_1 = arith.constant 0 : i32
    return %arg0, %c0_i32, %c0_i32_0 : i32, i32, i32
  }
}

</mosaic_0001>

<bundles_post_ra>
// kernel: tpu_custom_call.1
= control target key start
LH: loop header
LB: loop body
LE: loop exit
PB: predicated region body
PF: predicated region fallthrough
CT: control target
= control target key end

     0   :  { %s3801_s0 = inlined_call_operand.vmem [shape: f32[2,128,256], index: 0, kind: input, shape index: {}]   ;;  %s3802_s1 = inlined_call_operand.vmem [shape: f32[64,128], index: 1, kind: input, shape index: {}]   ;;  %s3803_s2 = inlined_call_operand.vmem [shape: f32[64,1], index: 2, kind: input, shape index: {}]   ;;  %s3804_s3 = inlined_call_operand.vmem [shape: f32[1,128], index: 3, kind: input, shape index: {}]   ;;  %s3805_s4 = inlined_call_operand.<no memory space> [shape: f32[1,1], index: 4, kind: input, shape index: {}]   ;;  %s3806_s5 = inlined_call_operand.vmem [shape: f32[128,64], index: 5, kind: input, shape index: {}]   ;;  %s3807_s6 = inlined_call_operand.vmem [shape: f32[128,1], index: 6, kind: input, shape index: {}]   ;;  %s3808_s7 = inlined_call_operand.vmem [shape: f32[128,1], index: 7, kind: input, shape index: {}]   ;;  %s3809_s8 = inlined_call_operand.vmem [shape: f32[128,1], index: 8, kind: input, shape index: {}]   ;;  %s3810_s9 = inlined_call_operand.vmem [shape: f32[64,128], index: 9, kind: input, shape index: {}]   ;;  %s3811_s10 = inlined_call_operand.vmem [shape: f32[64,1], index: 10, kind: input, shape index: {}]   ;;  %s3812_s11 = inlined_call_operand.vmem [shape: f32[64,128], index: 11, kind: input, shape index: {}]   ;;  %s3813_s12 = inlined_call_operand.vmem [shape: f32[64,1], index: 12, kind: input, shape index: {}]   ;;  %s3814_s13 = inlined_call_operand.hbm [shape: f32[2,128,256], index: 13, kind: output, shape index: {}]  }
   0x1   :  { %3828 = sst [smem:[#allocation14_spill]] %s3801_s0  ;;  %v18_v0 = vstv %s3805_s4 }
   0x2   :  { %19 = vst [vmem:[#allocation2] sm:$0x1] %v18_v0 }
   0x3   :  { %20 = vsyncpa [#allocation4], 0 }
   0x4   :  { %22 = vsyncpa [#allocation4 + $0x1], 0  ;;  %s2783_s27 = smov 0   ;;  %s2785_s28 = smov 0  }
   0x5   :  { %s2787_s29 = smov 0   ;;  %s2789_s30 = smov 0  }
   0x6 LB: > { %s2804_s4 = sadd.s32 4294967295, %s2701_s30   ;;  %s2090_s14 = sadd.s32 4294967294, %s2701_s30   ;;  %s2701_s30 = sphi %s2789_s30, %s3851_s30   ;;  %s2697_s29 = sphi %s2787_s29, %s3850_s29   ;;  %s2693_s28 = sphi %s2785_s28, %s3849_s28   ;;  %s2689_s27 = sphi %s2783_s27, %s3848_s27  }
   0x7   : > { %s2808_s15 = sadd.s32 1, %s2701_s30   ;;  %s313_s16 = sadd.s32 1, %s2697_s29 }
   0x8   : > { %s310_s17 = ssub.s32 %s2701_s30, %s2808_s15  ;;  %p323_p0 = scmp.ne.s32.totalorder %s2697_s29, %s2693_s28 }
   0x9   : > { %p311_p1 = scmp.eq.s32.totalorder %s310_s17, 0  ;;  %p324_p2 = scmp.eq.s32.totalorder %s2804_s4, 1 }
   0xa   : > { %p329_p3 = scmp.ne.s32.totalorder %s2693_s28, %s2689_s27  ;;  %p330_p4 = scmp.eq.s32.totalorder %s2090_s14, 1 }
   0xb   : > { %s2819_s18 = scalar_select %p311_p1, %s2697_s29, %s313_s16  }
   0xc   : > { %p2821_p5 = por %p324_p2, %p323_p0  ;;  %p2825_p6 = por %p330_p4, %p329_p3 }
   0xd   : > { %3829 = sst [smem:[#allocation6_spill]] %s2819_s18  ;;  %p2093_p7 = scmp.ge.s32.totalorder %s2701_s30, 1 }
   0xe   : > { %p392_p8 = scmp.lt.s32.totalorder %s2701_s30, 3 }
  0x10   : > { %p393_p9 = pnand %p2093_p7, %p392_p8 }
  0x12   : > { %396 = sbr.rel (%p393_p9) target bundleno = 2425 (0x979), region = 72 }
  0x17   : > { %p436_p10 = scmp.lt.s32.totalorder %s2804_s4, 1  ;;  %v2703_v1 = vmov 1.0   ;;  %s3832_s0 = sld [smem:[#allocation14_spill]]  ;;  %v539_v34 = vld [vmem:[%s3812_s11] sm:$0xff]  ;;  %vm2705_vm0 = vmmov 0   ;;  %vm853_vm1 = vcmask 7168  }
  0x18   : > { %2139 = vmatprep.subr.mxu0 %v2703_v1  ;;  %2332 = vmatprep.mubr.f32.mxu1 %v539_v34  ;;  %vm961_vm2 = vcmask 523264   ;;  %vm1067_vm3 = vcmask 1040384   ;;  %s433_s23 = sand.u32 1, %s2693_s28  }
  0x19   : > { %2140 = vmatpush3.msra.mxu0 %v2703_v1  ;;  %s437_s21 = scalar_select %p436_p10, %s2804_s4, 1 }
  0x1a   : > { %2141 = vmatprep.subr.mxu0 %v2703_v1  ;;  %s2094_s24 = sshll.u32 %s433_s23, 8 }
  0x1b   : > { %2142 = vmatpush3.msra.mxu0 %v2703_v1  ;;  %s2137_s22 = sshll.u32 %s437_s21, 8  ;;  %s3656_s26 = scalar_lea.vmem [#allocation3], %s2094_s24 }
  0x1c   : > { %2143 = vmatprep.subr.mxu0 %v2703_v1  ;;  %s2028_s18 = sshll.u32 %s3656_s26, 4  ;;  %s3753_s18 = int_to_ptr.vmem [resolvable:$true] %s2028_s18 }
  0x1d   : > { %s2836_s25 = scalar_lea.vmem %s3832_s0, %s2137_s22  ;;  %2144 = vmatpush3.msra.mxu0 %v2703_v1  ;;  %s2138_s0 = sshll.u32 %s2804_s4, 12 }
  0x1e   : > { %v2839_v2 = vld [vmem:[%s2836_s25 + $0x8] sm:$0xff]  ;;  %2145 = vmatprep.subr.mxu0 %v2703_v1  ;;  %v2843_v3 = vld [vmem:[%s2836_s25] sm:$0xff]  ;;  %v2846_v4 = vld [vmem:[%s2836_s25 + $0x18] sm:$0xff]  ;;  %s3751_s17 = scalar_lea.hbm %s3814_s13, %s2138_s0  ;;  %s3761_s4 = scalar_lea.sflag [#allocation4], %s433_s23 }
  0x1f   : > { %3833 = vst [vmem:[#allocation7_spill] sm:$0xff] %v2839_v2  ;;  %651 = vmatprep.mubr.f32.mxu0 %v2839_v2  ;;  %2146 = vmatpush3.msra.mxu0 %v2703_v1  ;;  %3834 = vst [vmem:[#allocation8_spill] sm:$0xff] %v2843_v3  ;;  %v2851_v5 = vld [vmem:[%s2836_s25 + $0x10] sm:$0xff]  ;;  %v2854_v6 = vld [vmem:[%s2836_s25 + $0x28] sm:$0xff]  ;;  %s2641_s21 = scalar_lea.vmem %s3753_s18, 4096  ;;  %s2707_s22 = smov [#allocation3]  }
  0x20   : > { %2147 = vmatprep.subr.mxu0 %v2703_v1  ;;  %3835 = vst [vmem:[#allocation9_spill] sm:$0xff] %v2846_v4  ;;  %3836 = vst [vmem:[#allocation10_spill] sm:$0xff] %v2851_v5  ;;  %v2859_v7 = vld [vmem:[%s2836_s25 + $0x20] sm:$0xff]  ;;  %v2862_v8 = vld [vmem:[%s2836_s25 + $0x38] sm:$0xff]  ;;  %p2642_p11 = scmp.ne.s32.totalorder %s3753_s18, %s2641_s21  ;;  %s2645_s24 = sshll.u32 %s2707_s22, 4  ;;  %s2646_s24 = int_to_ptr.vmem [resolvable:$false] %s2645_s24 }
  0x21   : > { %2148 = vmatpush3.msra.mxu0 %v2703_v1  ;;  %3837 = vst [vmem:[#allocation11_spill] sm:$0xff] %v2854_v6  ;;  %3838 = vst [vmem:[#allocation12_spill] sm:$0xff] %v2859_v7  ;;  %v2867_v9 = vld [vmem:[%s2836_s25 + $0x30] sm:$0xff]  ;;  %v2870_v10 = vld [vmem:[%s2836_s25 + $0x48] sm:$0xff]  ;;  %s2647_s0 = scalar_lea.vmem %s2646_s24, 8192  ;;  %p2648_p0 = scmp.lt.s32.totalorder %s3753_s18, %s2646_s24 }
  0x22   : > { %2149 = vmatprep.subr.mxu0 %v2703_v1  ;;  %3839 = vst [vmem:[#allocation13_spill] sm:$0xff] %v2867_v9  ;;  %v2875_v11 = vld [vmem:[%s2836_s25 + $0x40] sm:$0xff]  ;;  %v2878_v12 = vld [vmem:[%s2836_s25 + $0x58] sm:$0xff]  ;;  %v2883_v13 = vld [vmem:[%s2836_s25 + $0x50] sm:$0xff]  ;;  %p2643_p12 = pnand %p2642_p11, %p2821_p5  ;;  %p2649_p1 = scmp.lt.s32.totalorder %s2647_s0, %s2641_s21 }
  0x23   : > { %2150 = vmatpush3.msra.mxu0 %v2703_v1  ;;  %v2886_v14 = vld [vmem:[%s2836_s25 + $0x68] sm:$0xff]  ;;  %v2891_v15 = vld [vmem:[%s2836_s25 + $0x60] sm:$0xff]  ;;  %v2894_v16 = vld [vmem:[%s2836_s25 + $0x78] sm:$0xff] }
  0x24   : > { %2151 = vmatprep.subr.mxu0 %v2703_v1  ;;  %v2899_v17 = vld [vmem:[%s2836_s25 + $0x70] sm:$0xff]  ;;  %v2902_v18 = vld [vmem:[%s2836_s25 + $0x88] sm:$0xff]  ;;  %v2907_v19 = vld [vmem:[%s2836_s25 + $0x80] sm:$0xff]  ;;  %p2644_p13 = pneg %p2643_p12  ;;  %p2650_p2 = por %p2649_p1, %p2648_p0 }
  0x25   : > { %2152 = vmatpush3.msra.mxu0 %v2703_v1  ;;  %v2910_v20 = vld [vmem:[%s2836_s25 + $0x98] sm:$0xff]  ;;  %v2915_v21 = vld [vmem:[%s2836_s25 + $0x90] sm:$0xff]  ;;  %v2918_v22 = vld [vmem:[%s2836_s25 + $0xa8] sm:$0xff] }
  0x26   : > { %2153 = vmatprep.subr.mxu0 %v2703_v1  ;;  %v2923_v23 = vld [vmem:[%s2836_s25 + $0xa0] sm:$0xff]  ;;  %v2926_v24 = vld [vmem:[%s2836_s25 + $0xb8] sm:$0xff]  ;;  %v2931_v25 = vld [vmem:[%s2836_s25 + $0xb0] sm:$0xff]  ;;  %p2651_p3 = pnand %p2650_p2, %p2644_p13 }
  0x27   : > { %2154 = vmatpush3.msra.mxu0 %v2703_v1  ;;  %v2934_v26 = vld [vmem:[%s2836_s25 + $0xc8] sm:$0xff]  ;;  %v2939_v27 = vld [vmem:[%s2836_s25 + $0xc0] sm:$0xff]  ;;  %v2942_v28 = vld [vmem:[%s2836_s25 + $0xd8] sm:$0xff] }
  0x28   : > { %2155 = vmatprep.subr.mxu0 %v2703_v1  ;;  %v2947_v29 = vld [vmem:[%s2836_s25 + $0xd0] sm:$0xff]  ;;  %v2950_v30 = vld [vmem:[%s2836_s25 + $0xe8] sm:$0xff]  ;;  %v2955_v31 = vld [vmem:[%s2836_s25 + $0xe0] sm:$0xff] }
  0x29   : > { %2156 = vmatpush3.msra.mxu0 %v2703_v1  ;;  %v2958_v32 = vld [vmem:[%s2836_s25 + $0xf8] sm:$0xff]  ;;  %v2963_v33 = vld [vmem:[%s2836_s25 + $0xf0] sm:$0xff] }
  0x2a   : > { %2157 = vmatprep.subr.mxu0 %v2703_v1 }
  0x2b   : > { %2158 = vmatpush3.msra.mxu0 %v2703_v1 }
  0x2c   : > { %2159 = vmatprep.subr.mxu0 %v2703_v1 }
  0x2d   : > { %2160 = vmatpush3.msra.mxu0 %v2703_v1 }
  0x2e   : > { %2161 = vmatprep.subr.mxu0 %v2703_v1 }
  0x2f   : > { %2162 = vmatpush3.msra.mxu0 %v2703_v1 }
  0x30   : > { %2163 = vmatprep.subr.mxu0 %v2703_v1 }
  0x31   : > { %2164 = vmatpush3.msra.mxu0 %v2703_v1 }
  0x32   : > { %2165 = vmatprep.subr.mxu0 %v2703_v1 }
  0x33   : > { %2166 = vmatpush3.msra.mxu0 %v2703_v1 }
  0x34   : > { %2167 = vmatprep.subr.mxu0 %v2703_v1 }
  0x35   : > { %2168 = vmatpush3.msra.mxu0 %v2703_v1 }
  0x36   : > { %2169 = vmatprep.subr.mxu0 %v2703_v1 }
  0x37   : > { %2170 = vmatpush3.msra.mxu0 %v2703_v1 }
  0x38   : > { %652 = vmatmul.mubr.f32.vlgmr.msra.gmra.mxu0 %v2843_v3 }
  0x39   : > { %656 = vmatprep.mubr.f32.mxu0 %v2846_v4 }
  0x3c   : > { %657 = vmatmul.mubr.f32.gmra.mxu0 %v2851_v5 }
  0x3d   : > { %661 = vmatprep.mubr.f32.mxu0 %v2854_v6 }
  0x40   : > { %662 = vmatmul.mubr.f32.gmra.mxu0 %v2859_v7 }
  0x41   : > { %666 = vmatprep.mubr.f32.mxu0 %v2862_v8 }
  0x44   : > { %667 = vmatmul.mubr.f32.gmra.mxu0 %v2867_v9 }
  0x45   : > { %671 = vmatprep.mubr.f32.mxu0 %v2870_v10 }
  0x48   : > { %672 = vmatmul.mubr.f32.gmra.mxu0 %v2875_v11 }
  0x49   : > { %676 = vmatprep.mubr.f32.mxu0 %v2878_v12 }
  0x4c   : > { %677 = vmatmul.mubr.f32.gmra.mxu0 %v2883_v13 }
  0x4d   : > { %681 = vmatprep.mubr.f32.mxu0 %v2886_v14 }
  0x50   : > { %682 = vmatmul.mubr.f32.gmra.mxu0 %v2891_v15 }
  0x51   : > { %686 = vmatprep.mubr.f32.mxu0 %v2894_v16 }
  0x54   : > { %687 = vmatmul.mubr.f32.gmra.mxu0 %v2899_v17 }
  0x55   : > { %691 = vmatprep.mubr.f32.mxu0 %v2902_v18 }
  0x58   : > { %692 = vmatmul.mubr.f32.gmra.mxu0 %v2907_v19 }
  0x59   : > { %696 = vmatprep.mubr.f32.mxu0 %v2910_v20 }
  0x5c   : > { %697 = vmatmul.mubr.f32.gmra.mxu0 %v2915_v21 }
  0x5d   : > { %701 = vmatprep.mubr.f32.mxu0 %v2918_v22 }
  0x60   : > { %702 = vmatmul.mubr.f32.gmra.mxu0 %v2923_v23 }
  0x61   : > { %706 = vmatprep.mubr.f32.mxu0 %v2926_v24 }
  0x64   : > { %707 = vmatmul.mubr.f32.gmra.mxu0 %v2931_v25 }
  0x65   : > { %711 = vmatprep.mubr.f32.mxu0 %v2934_v26 }
  0x68   : > { %712 = vmatmul.mubr.f32.gmra.mxu0 %v2939_v27 }
  0x69   : > { %716 = vmatprep.mubr.f32.mxu0 %v2942_v28 }
  0x6c   : > { %717 = vmatmul.mubr.f32.gmra.mxu0 %v2947_v29 }
  0x6d   : > { %721 = vmatprep.mubr.f32.mxu0 %v2950_v30 }
  0x70   : > { %722 = vmatmul.mubr.f32.gmra.mxu0 %v2955_v31 }
  0x71   : > { %726 = vmatprep.mubr.f32.mxu0 %v2958_v32 }
  0x74   : > { %727 = vmatmul.mubr.f32.gmra.mxu0 %v2963_v33 }
  0xf8   : > { %v2171_v35 = vpop.f32.mrf.mxu0 }
  0xfa   : > { %v2172_v36 = vpop.f32.mrf.mxu0 }
  0xfb   : > { %v2969_v37 = vadd.f32 %v2172_v36, %v2171_v35 }
  0xfc   : > { %v2174_v38 = vpop.f32.mrf.mxu0 }
  0xfe   : > { %v2175_v39 = vpop.f32.mrf.mxu0 }
  0xff   : > { %v2971_v40 = vadd.f32 %v2175_v39, %v2174_v38 }
 0x100   : > { %v2177_v41 = vpop.f32.mrf.mxu0 }
 0x102   : > { %v2178_v42 = vpop.f32.mrf.mxu0 }
 0x103   : > { %v2973_v43 = vadd.f32 %v2178_v42, %v2177_v41 }
 0x104   : > { %v2180_v44 = vpop.f32.mrf.mxu0 }
 0x106   : > { %v2181_v45 = vpop.f32.mrf.mxu0 }
 0x107   : > { %v2975_v46 = vadd.f32 %v2181_v45, %v2180_v44 }
 0x108   : > { %v2183_v47 = vpop.f32.mrf.mxu0 }
 0x10a   : > { %v2184_v48 = vpop.f32.mrf.mxu0 }
 0x10b   : > { %v2977_v49 = vadd.f32 %v2184_v48, %v2183_v47 }
 0x10c   : > { %v2186_v50 = vpop.f32.mrf.mxu0 }
 0x10e   : > { %v2187_v51 = vpop.f32.mrf.mxu0 }
 0x110   : > { %v2189_v52 = vpop.f32.mrf.mxu0 }
 0x112   : > { %v2190_v53 = vpop.f32.mrf.mxu0 }
 0x114   : > { %v2192_v54 = vpop.f32.mrf.mxu0 }
 0x116   : > { %v2193_v55 = vpop.f32.mrf.mxu0 }
 0x118   : > { %v2195_v56 = vpop.f32.mrf.mxu0 }
 0x11a   : > { %v2196_v57 = vpop.f32.mrf.mxu0 }
 0x11c   : > { %v2198_v58 = vpop.f32.mrf.mxu0 }
 0x11e   : > { %v2199_v59 = vpop.f32.mrf.mxu0 }
 0x11f   : > { %v2200_v6 = vadd.f32 %v2199_v59, %v2198_v58  ;;  %v529_v58 = vld [vmem:[%s3810_s9 + $0x30] sm:$0xff] }
 0x120   : > { %v2201_v60 = vpop.f32.mrf.mxu0 }
 0x122   : > { %v2202_v61 = vpop.f32.mrf.mxu0 }
 0x123   : > { %v2203_v4 = vadd.f32 %v2202_v61, %v2201_v60  ;;  %v528_v61 = vld [vmem:[%s3810_s9 + $0x28] sm:$0xff] }
 0x124   : > { %v2204_v62 = vpop.f32.mrf.mxu0 }
 0x126   : > { %v2205_v63 = vpop.f32.mrf.mxu0 }
 0x127   : > { %v2206_v2 = vadd.f32 %v2205_v63, %v2204_v62  ;;  %v2191_v62 = vadd.f32 %v2190_v53, %v2189_v52  ;;  %v546_v52 = vld [vmem:[%s3812_s11 + $0x38] sm:$0xff] }
 0x128   : > { %v2207_v0 = vpop.f32.mrf.mxu0 }
 0x129   : > { %v743_v9 = vmul.f32 0.00390625, %v2206_v2 }
 0x12a   : > { %v2208_v1 = vpop.f32.mrf.mxu0 }
 0x12b   : > { %v2209_v48 = vadd.f32 %v2208_v1, %v2207_v0  ;;  %v2194_v0 = vadd.f32 %v2193_v55, %v2192_v54  ;;  %v741_v1 = vmul.f32 0.00390625, %v2200_v6  ;;  %v735_v6 = vmul.f32 0.00390625, %v2975_v46  ;;  %v541_v46 = vld [vmem:[%s3812_s11 + $0x10] sm:$0xff] }
 0x12c   : > { %v2210_v34 = vpop.f32.mrf.mxu0 }
 0x12d   : > { %v744_v7 = vmul.f32 0.00390625, %v2209_v48  ;;  %v739_v60 = vmul.f32 0.00390625, %v2194_v0 }
 0x12e   : > { %v2211_v35 = vpop.f32.mrf.mxu0 }
 0x12f   : > { %v2212_v45 = vadd.f32 %v2211_v35, %v2210_v34  ;;  %v547_v34 = vld [vmem:[%s3813_s12] sm:$0xff]  ;;  %v552_v35 = vld [vmem:[%s3813_s12 + $0x28] sm:$0xff] }
 0x130   : > { %v2213_v36 = vpop.f32.mrf.mxu0 }
 0x131   : > { %v745_v5 = vmul.f32 0.00390625, %v2212_v45  ;;  %v550_v45 = vld [vmem:[%s3813_s12 + $0x18] sm:$0xff] }
 0x132   : > { %v2214_v38 = vpop.f32.mrf.mxu0 }
 0x133   : > { %v2215_v42 = vadd.f32 %v2214_v38, %v2213_v36  ;;  %v2197_v36 = vadd.f32 %v2196_v57, %v2195_v56  ;;  %v742_v38 = vmul.f32 0.00390625, %v2203_v4  ;;  %v736_v4 = vmul.f32 0.00390625, %v2977_v49  ;;  %v540_v49 = vld [vmem:[%s3812_s11 + $0x8] sm:$0xff]  ;;  %v530_v56 = vld [vmem:[%s3810_s9 + $0x38] sm:$0xff] }
 0x134   : > { %v2216_v39 = vpop.f32.mrf.mxu0  ;;  %v2704_v57 = vmov 0.0  }
 0x135   : > { %v746_v3 = vmul.f32 0.00390625, %v2215_v42  ;;  %v740_v63 = vmul.f32 0.00390625, %v2197_v36  ;;  %v548_v42 = vld [vmem:[%s3813_s12 + $0x8] sm:$0xff]  ;;  %v554_v36 = vld [vmem:[%s3813_s12 + $0x38] sm:$0xff] }
 0x136   : > { %v2217_v41 = vpop.f32.mrf.mxu0 }
 0x137   : > { %v2218_v44 = vadd.f32 %v2217_v41, %v2216_v39  ;;  %v551_v41 = vld [vmem:[%s3813_s12 + $0x20] sm:$0xff] }
 0x139   : > { %v747_v47 = vmul.f32 0.00390625, %v2218_v44  ;;  %v527_v44 = vld [vmem:[%s3810_s9 + $0x20] sm:$0xff] }
 0x13b   : > { %2300 = vmatprep.subr.mxu1 %v747_v47 }
 0x13c   : > { %2301 = vmatpush3.msra.mxu1 %v747_v47  ;;  %v549_v47 = vld [vmem:[%s3813_s12 + $0x10] sm:$0xff] }
 0x13d   : > { %2302 = vmatprep.subr.mxu1 %v746_v3 }
 0x13e   : > { %2303 = vmatpush3.msra.mxu1 %v746_v3  ;;  %v2188_v3 = vadd.f32 %v2187_v51, %v2186_v50  ;;  %v732_v50 = vmul.f32 0.00390625, %v2969_v37  ;;  %v543_v37 = vld [vmem:[%s3812_s11 + $0x20] sm:$0xff]  ;;  %v545_v51 = vld [vmem:[%s3812_s11 + $0x30] sm:$0xff] }
 0x13f   : > { %2304 = vmatprep.subr.mxu1 %v745_v5 }
 0x140   : > { %2305 = vmatpush3.msra.mxu1 %v745_v5  ;;  %v738_v5 = vmul.f32 0.00390625, %v2191_v62  ;;  %v737_v2 = vmul.f32 0.00390625, %v2188_v3  ;;  %v526_v62 = vld [vmem:[%s3810_s9 + $0x18] sm:$0xff] }
 0x141   : > { %2306 = vmatprep.subr.mxu1 %v744_v7 }
 0x142   : > { %2307 = vmatpush3.msra.mxu1 %v744_v7  ;;  %v734_v7 = vmul.f32 0.00390625, %v2973_v43  ;;  %v544_v43 = vld [vmem:[%s3812_s11 + $0x28] sm:$0xff] }
 0x143   : > { %2308 = vmatprep.subr.mxu1 %v743_v9 }
 0x144   : > { %2309 = vmatpush3.msra.mxu1 %v743_v9  ;;  %v733_v9 = vmul.f32 0.00390625, %v2971_v40  ;;  %v542_v40 = vld [vmem:[%s3812_s11 + $0x18] sm:$0xff] }
 0x145   : > { %2310 = vmatprep.subr.mxu1 %v742_v38 }
 0x146   : > { %2311 = vmatpush3.msra.mxu1 %v742_v38 }
 0x147   : > { %2312 = vmatprep.subr.mxu1 %v741_v1 }
 0x148   : > { %2313 = vmatpush3.msra.mxu1 %v741_v1 }
 0x149   : > { %2314 = vmatprep.subr.mxu1 %v740_v63 }
 0x14a   : > { %2315 = vmatpush3.msra.mxu1 %v740_v63 }
 0x14b   : > { %2316 = vmatprep.subr.mxu1 %v739_v60 }
 0x14c   : > { %2317 = vmatpush3.msra.mxu1 %v739_v60  ;;  %v553_v60 = vld [vmem:[%s3813_s12 + $0x30] sm:$0xff] }
 0x14d   : > { %2318 = vmatprep.subr.mxu1 %v738_v5 }
 0x14e   : > { %2319 = vmatpush3.msra.mxu1 %v738_v5 }
 0x14f   : > { %2320 = vmatprep.subr.mxu1 %v737_v2 }
 0x150   : > { %2321 = vmatpush3.msra.mxu1 %v737_v2 }
 0x151   : > { %2322 = vmatprep.subr.mxu1 %v736_v4 }
 0x152   : > { %2323 = vmatpush3.msra.mxu1 %v736_v4 }
 0x153   : > { %2324 = vmatprep.subr.mxu1 %v735_v6 }
 0x154   : > { %2325 = vmatpush3.msra.mxu1 %v735_v6 }
 0x155   : > { %2326 = vmatprep.subr.mxu1 %v734_v7 }
 0x156   : > { %2327 = vmatpush3.msra.mxu1 %v734_v7  ;;  %v525_v7 = vld [vmem:[%s3810_s9 + $0x10] sm:$0xff] }
 0x157   : > { %2328 = vmatprep.subr.mxu1 %v733_v9 }
 0x158   : > { %2329 = vmatpush3.msra.mxu1 %v733_v9 }
 0x159   : > { %2330 = vmatprep.subr.mxu1 %v732_v50 }
 0x15a   : > { %2331 = vmatpush3.msra.mxu1 %v732_v50 }
 0x15b   : > { %2333 = vmatmul.mubr.f32.vlgmr.msra.gmra.mxu1 %v540_v49  ;;  %2344 = vmatprep.subr.mxu1 %v2704_v57 }
 0x15c   : > { %2335 = vmatprep.mubr.f32.mxu1 %v541_v46  ;;  %2345 = vmatpush3.msra.mxu1 %v530_v56 }
 0x15d   : > { %2346 = vmatprep.subr.mxu1 %v2704_v57 }
 0x15e   : > { %2347 = vmatpush3.msra.mxu1 %v529_v58 }
 0x15f   : > { %2336 = vmatmul.mubr.f32.gmra.mxu1 %v542_v40  ;;  %2348 = vmatprep.subr.mxu1 %v2704_v57 }
 0x160   : > { %2338 = vmatprep.mubr.f32.mxu1 %v543_v37  ;;  %2349 = vmatpush3.msra.mxu1 %v528_v61  ;;  %v524_v37 = vld [vmem:[%s3810_s9 + $0x8] sm:$0xff] }
 0x161   : > { %2350 = vmatprep.subr.mxu1 %v2704_v57 }
 0x162   : > { %2351 = vmatpush3.msra.mxu1 %v527_v44 }
 0x163   : > { %2339 = vmatmul.mubr.f32.gmra.mxu1 %v544_v43  ;;  %2352 = vmatprep.subr.mxu1 %v2704_v57 }
 0x164   : > { %2341 = vmatprep.mubr.f32.mxu1 %v545_v51  ;;  %2353 = vmatpush3.msra.mxu1 %v526_v62 }
 0x165   : > { %2354 = vmatprep.subr.mxu1 %v2704_v57 }
 0x166   : > { %2355 = vmatpush3.msra.mxu1 %v525_v7 }
 0x167   : > { %2342 = vmatmul.mubr.f32.gmra.mxu1 %v546_v52  ;;  %2356 = vmatprep.subr.mxu1 %v2704_v57 }
 0x168   : > { %2360 = vmatprep.mubr.msk.f32.mxu1 %vm2705_vm0, %v2704_v57  ;;  %2357 = vmatpush3.msra.mxu1 %v524_v37 }
 0x169   : > { %2358 = vmatprep.subr.mxu1 %v2704_v57 }
 0x21b   : > { %v2334_v53 = vpop.f32.mrf.mxu1 }
 0x21c   : > { %v820_v63 = vadd.f32 %v2334_v53, %v548_v42 }
 0x21d   : > { %v814_v54 = vpop.f32.mrf.mxu1 }
 0x21e   : > { %v815_v38 = vadd.f32 %v814_v54, %v547_v34  ;;  %v855_v51 = vsel %vm853_vm1, %v820_v63, -inf }
 0x21f   : > { %v2337_v55 = vpop.f32.mrf.mxu1 }
 0x220   : > { %v830_v5 = vadd.f32 %v2337_v55, %v550_v45  ;;  %v854_v50 = vsel %vm853_vm1, %v815_v38, -inf  ;;  %v523_v55 = vld [vmem:[%s3810_s9] sm:$0xff] }
 0x221   : > { %v824_v59 = vpop.f32.mrf.mxu1  ;;  %2359 = vmatpush3.msra.mxu1 %v523_v55 }
 0x222   : > { %v825_v2 = vadd.f32 %v824_v59, %v549_v47  ;;  %v857_v52 = vsel %vm853_vm1, %v830_v5, -inf  ;;  %1069 = vmatprep.subr.mxu1 %v2958_v32 }
 0x223   : > { %v2340_v39 = vpop.f32.mrf.mxu1 }
 0x224   : > { %v3042_v0 = vadd.f32 %v2340_v39, %v552_v35  ;;  %v856_v53 = vsel %vm853_vm1, %v825_v2, -inf }
 0x225   : > { %v834_v48 = vpop.f32.mrf.mxu1 }
 0x226   : > { %v835_v1 = vadd.f32 %v834_v48, %v551_v41  ;;  %v860_v49 = vsel %vm853_vm1, %v3042_v0, -inf }
 0x227   : > { %v2343_v3 = vpop.f32.mrf.mxu1  ;;  %v861_v56 = vmax.f32 %v855_v51, %v860_v49 }
 0x228   : > { %v858_v4 = vsel %vm853_vm1, %v835_v1, -inf  ;;  %v850_v6 = vadd.f32 %v2343_v3, %v554_v36 }
 0x229   : > { %v844_v9 = vpop.f32.mrf.mxu1  ;;  %v859_v43 = vmax.f32 %v854_v50, %v858_v4 }
 0x22a   : > { %v864_v46 = vsel %vm853_vm1, %v850_v6, -inf  ;;  %v845_v40 = vadd.f32 %v844_v9, %v553_v60 }
 0x22b   : > { %v865_v58 = vmax.f32 %v857_v52, %v864_v46  ;;  %v866_v61 = vmax.f32 %v859_v43, %v861_v56 }
 0x22c   : > { %v862_v54 = vsel %vm853_vm1, %v845_v40, -inf }
 0x22d   : > { %v863_v59 = vmax.f32 %v856_v53, %v862_v54 }
 0x22f   : > { %v867_v34 = vmax.f32 %v863_v59, %v865_v58 }
 0x231   : > { %v868_v35 = vmax.f32 %v866_v61, %v867_v34 }
 0x233   : > { %v869_v39 = vrot.slane %v868_v35, 4 }
 0x235   : > { %v870_v41 = vmax.f32 %v868_v35, %v869_v39 }
 0x237   : > { %v871_v42 = vrot.slane %v870_v41, 2 }
 0x239   : > { %v872_v44 = vmax.f32 %v870_v41, %v871_v42 }
 0x23b   : > { %v873_v45 = vrot.slane %v872_v44, 1 }
 0x23d   : > { %v874_v47 = vmax.f32 %v872_v44, %v873_v45 }
 0x23f   : > { %v877_v48 = vsub.f32 %v825_v2, %v874_v47  ;;  %v875_v36 = vsub.f32 %v815_v38, %v874_v47  ;;  %v876_v62 = vsub.f32 %v820_v63, %v874_v47  ;;  %v878_v3 = vsub.f32 %v830_v5, %v874_v47 }
 0x240   : > { %v879_v7 = vsub.f32 %v835_v1, %v874_v47  ;;  %v880_v50 = vsub.f32 %v3042_v0, %v874_v47  ;;  %v881_v46 = vsub.f32 %v845_v40, %v874_v47  ;;  %v882_v43 = vsub.f32 %v850_v6, %v874_v47 }
 0x241   : > { %v887_v60 = vmul.f32 1.442695, %v877_v48  ;;  %v883_v4 = vmul.f32 1.442695, %v875_v36  ;;  %v885_v9 = vmul.f32 1.442695, %v876_v62 }
 0x242   : > { %v889_v49 = vmul.f32 1.442695, %v878_v3  ;;  %v891_v37 = vmul.f32 1.442695, %v879_v7  ;;  %v893_v51 = vmul.f32 1.442695, %v880_v50 }
 0x243   : > { %2510 = vpow2.f32 %v887_v60  ;;  %v895_v2 = vmul.f32 1.442695, %v881_v46  ;;  %v897_v38 = vmul.f32 1.442695, %v882_v43  ;;  %v531_v50 = vld [vmem:[%s3811_s10] sm:$0xff]  ;;  %v533_v46 = vld [vmem:[%s3811_s10 + $0x10] sm:$0xff] }
 0x244   : > { %2512 = vpow2.f32 %v883_v4 }
 0x245   : > { %2514 = vpow2.f32 %v885_v9 }
 0x246   : > { %2516 = vpow2.f32 %v889_v49  ;;  %v532_v49 = vld [vmem:[%s3811_s10 + $0x8] sm:$0xff] }
 0x247   : > { %2518 = vpow2.f32 %v891_v37 }
 0x248   : > { %2520 = vpow2.f32 %v893_v51 }
 0x249   : > { %2522 = vpow2.f32 %v895_v2 }
 0x24a   : > { %2524 = vpow2.f32 %v897_v38  ;;  %v534_v38 = vld [vmem:[%s3811_s10 + $0x18] sm:$0xff] }
 0x250   : > { %v2511_v63 = vpop.eup %2510 }
 0x251   : > { %v2513_v1 = vpop.eup %2512  ;;  %v902_v54 = vsel %vm853_vm1, %v2511_v63, 0.0 }
 0x252   : > { %v2515_v5 = vpop.eup %2514  ;;  %v899_v0 = vsel %vm853_vm1, %v2513_v1, 0.0 }
 0x253   : > { %v900_v52 = vsel %vm853_vm1, %v2515_v5, 0.0  ;;  %v2517_v53 = vpop.eup %2516 }
 0x254   : > { %v901_v40 = vadd.f32 %v900_v52, %v899_v0  ;;  %v2519_v6 = vpop.eup %2518  ;;  %v904_v56 = vsel %vm853_vm1, %v2517_v53, 0.0 }
 0x255   : > { %v2521_v58 = vpop.eup %2520  ;;  %v906_v61 = vsel %vm853_vm1, %v2519_v6, 0.0 }
 0x256   : > { %v903_v55 = vadd.f32 %v902_v54, %v901_v40  ;;  %v2523_v34 = vpop.eup %2522  ;;  %v908_v39 = vsel %vm853_vm1, %v2521_v58, 0.0 }
 0x257   : > { %v2525_v41 = vpop.eup %2524  ;;  %v910_v44 = vsel %vm853_vm1, %v2523_v34, 0.0 }
 0x258   : > { %v905_v59 = vadd.f32 %v904_v56, %v903_v55  ;;  %v912_v47 = vsel %vm853_vm1, %v2525_v41, 0.0  ;;  %v535_v55 = vld [vmem:[%s3811_s10 + $0x20] sm:$0xff] }
 0x25a   : > { %v907_v35 = vadd.f32 %v906_v61, %v905_v59  ;;  %v536_v59 = vld [vmem:[%s3811_s10 + $0x28] sm:$0xff] }
 0x25c   : > { %v909_v42 = vadd.f32 %v908_v39, %v907_v35 }
 0x25e   : > { %v911_v45 = vadd.f32 %v910_v44, %v909_v42  ;;  %v537_v42 = vld [vmem:[%s3811_s10 + $0x30] sm:$0xff] }
 0x260   : > { %v913_v48 = vadd.f32 %v912_v47, %v911_v45 }
 0x262   : > { %v914_v36 = vrot.slane %v913_v48, 4 }
 0x264   : > { %v915_v62 = vadd.f32 %v914_v36, %v913_v48  ;;  %v538_v48 = vld [vmem:[%s3811_s10 + $0x38] sm:$0xff] }
 0x266   : > { %v916_v3 = vrot.slane %v915_v62, 2 }
 0x268   : > { %v917_v60 = vadd.f32 %v916_v3, %v915_v62 }
 0x26a   : > { %v918_v4 = vrot.slane %v917_v60, 1 }
 0x26c   : > { %v919_v7 = vadd.f32 %v918_v4, %v917_v60 }
 0x26e   : > { %2526 = vrcp.f32 %v919_v7 }
 0x27b   : > { %v2527_v9 = vpop.eup %2526 }
 0x27c   : > { %v921_v37 = vmul.f32 %v2527_v9, %v2513_v1  ;;  %v922_v43 = vmul.f32 %v2527_v9, %v2515_v5  ;;  %v923_v51 = vmul.f32 %v2527_v9, %v2511_v63  ;;  %v924_v2 = vmul.f32 %v2527_v9, %v2517_v53 }
 0x27d   : > { %v925_v54 = vmul.f32 %v2527_v9, %v2519_v6  ;;  %v926_v63 = vmul.f32 %v2527_v9, %v2521_v58  ;;  %v927_v6 = vmul.f32 %v2527_v9, %v2523_v34  ;;  %v928_v47 = vmul.f32 %v2527_v9, %v2525_v41 }
 0x27e   : > { %929 = vxpose.xlu0.b32.start [1/8] (short) (narrow) %v921_v37, 8  ;;  %v1035_v0 = vmul.f32 %v921_v37, %v531_v50  ;;  %v1036_v52 = vmul.f32 %v922_v43, %v532_v49  ;;  %v1037_v40 = vmul.f32 %v923_v51, %v533_v46  ;;  %v1038_v5 = vmul.f32 %v924_v2, %v534_v38  ;;  %v3841_v46 = vld [vmem:[#allocation11_spill] sm:$0xff]  ;;  %v3842_v37 = vld [vmem:[#allocation12_spill] sm:$0xff] }
 0x27f   : > { %v1039_v35 = vmul.f32 %v925_v54, %v535_v55  ;;  %v1040_v45 = vmul.f32 %v926_v63, %v536_v59  ;;  %v1041_v62 = vmul.f32 %v927_v6, %v537_v42  ;;  %v1042_v60 = vmul.f32 %v928_v47, %v538_v48  ;;  %v3846_v38 = vld [vmem:[#allocation8_spill] sm:$0xff] }
 0x280   : > { %v1043_v56 = vsel %vm853_vm1, %v1035_v0, 0.0  ;;  %v1044_v1 = vsel %vm853_vm1, %v1036_v52, 0.0  ;;  %v1046_v61 = vsel %vm853_vm1, %v1037_v40, 0.0  ;;  %v1048_v44 = vsel %vm853_vm1, %v1038_v5, 0.0  ;;  %v458_v0 = vld [vmem:[#allocation2] sm:$0x1] }
 0x281   : > { %v1045_v53 = vadd.f32 %v1044_v1, %v1043_v56  ;;  %v1050_v36 = vsel %vm853_vm1, %v1039_v35, 0.0  ;;  %v1052_v34 = vsel %vm853_vm1, %v1040_v45, 0.0  ;;  %v1054_v7 = vsel %vm853_vm1, %v1041_v62, 0.0 }
 0x282   : > { %930 = vxpose.xlu0.b32.cont [2/8] (short) (narrow) %v922_v43, 8  ;;  %v1056_v41 = vsel %vm853_vm1, %v1042_v60, 0.0  ;;  %v3843_v43 = vld [vmem:[#allocation9_spill] sm:$0xff]  ;;  %v2706_v52 = vmov 0   ;;  %v1145_v5 = vlaneseq }
 0x283   : > { %v1047_v39 = vadd.f32 %v1046_v61, %v1045_v53  ;;  %2508 = vset.pattern.permute.xlu1 %v2706_v52 }
 0x284   : > { %1142 = vperm.xlu1 %2508, %v458_v0  }
 0x285   : > { %v1049_v58 = vadd.f32 %v1048_v44, %v1047_v39 }
 0x286   : > { %931 = vxpose.xlu0.b32.cont [3/8] (short) (narrow) %v923_v51, 8  ;;  %v3844_v51 = vld [vmem:[#allocation10_spill] sm:$0xff] }
 0x287   : > { %v1051_v3 = vadd.f32 %v1050_v36, %v1049_v58 }
 0x289   : > { %v1053_v4 = vadd.f32 %v1052_v34, %v1051_v3 }
 0x28a   : > { %932 = vxpose.xlu0.b32.cont [4/8] (short) (narrow) %v924_v2, 8  ;;  %v3845_v2 = vld [vmem:[#allocation7_spill] sm:$0xff] }
 0x28b   : > { %v1055_v50 = vadd.f32 %v1054_v7, %v1053_v4 }
 0x28d   : > { %v3115_v9 = vadd.f32 %v1056_v41, %v1055_v50 }
 0x28e   : > { %933 = vxpose.xlu0.b32.cont [5/8] (short) (narrow) %v925_v54, 8  ;;  %v457_v54 = vld [vmem:[%s3804_s3] sm:$0x1] }
 0x292   : > { %934 = vxpose.xlu0.b32.cont [6/8] (short) (narrow) %v926_v63, 8  ;;  %v3154_v63 = vshrl.u32 %v1145_v5, 7 }
 0x294   : > { %v1147_v53 = vsub.s32 0, %v3154_v63 }
 0x296   : > { %935 = vxpose.xlu0.b32.cont [7/8] (short) (narrow) %v927_v6, 8 }
 0x29a   : > { %936 = vxpose.xlu0.b32.end [8/8] (short) (narrow) %v928_v47, 8 }
 0x2c3   : > { %2509 = vset.pattern.permute.xlu0 %v2706_v52 }
 0x2fa   : > { %v945_v49 = vpop.trf.xlu0 }
 0x2fb   : > { %2361 = vmatmul.mubr.msk.f32.vlgmr.msra.gmra.mxu1 %vm961_vm2, %v945_v49 }
 0x2fc   : > { %1070 = vmatpush1.msra.mxu1 %v2963_v33  ;;  %1133 = vmatprep.mubr.f32.mxu1 %v2704_v57  ;;  %v3840_v57 = vld [vmem:[#allocation13_spill] sm:$0xff] }
 0x2fd   : > { %1071 = vmatprep.subr.mxu1 %v2950_v30 }
 0x2fe   : > { %1072 = vmatpush1.msra.mxu1 %v2955_v31 }
 0x2ff   : > { %1073 = vmatprep.subr.mxu1 %v2942_v28  ;;  %v1143_v59 = vpop.permute.xlu1 %1142 }
 0x300   : > { %1074 = vmatpush1.msra.mxu1 %v2947_v29  ;;  %v1148_v61 = vrot.slane %v1143_v59, %v1147_v53 }
 0x301   : > { %1075 = vmatprep.subr.mxu1 %v2934_v26 }
 0x302   : > { %1076 = vmatpush1.msra.mxu1 %v2939_v27 }
 0x303   : > { %1077 = vmatprep.subr.mxu1 %v2926_v24 }
 0x304   : > { %1078 = vmatpush1.msra.mxu1 %v2931_v25 }
 0x305   : > { %1079 = vmatprep.subr.mxu1 %v2918_v22 }
 0x306   : > { %1080 = vmatpush1.msra.mxu1 %v2923_v23 }
 0x307   : > { %1081 = vmatprep.subr.mxu1 %v2910_v20 }
 0x308   : > { %1082 = vmatpush1.msra.mxu1 %v2915_v21 }
 0x309   : > { %1083 = vmatprep.subr.mxu1 %v2902_v18 }
 0x30a   : > { %1084 = vmatpush1.msra.mxu1 %v2907_v19 }
 0x30b   : > { %1085 = vmatprep.subr.mxu1 %v2894_v16 }
 0x30c   : > { %1086 = vmatpush1.msra.mxu1 %v2899_v17 }
 0x30d   : > { %1087 = vmatprep.subr.mxu1 %v2886_v14 }
 0x30e   : > { %1088 = vmatpush1.msra.mxu1 %v2891_v15 }
 0x30f   : > { %1089 = vmatprep.subr.mxu1 %v2878_v12 }
 0x310   : > { %1090 = vmatpush1.msra.mxu1 %v2883_v13 }
 0x311   : > { %1091 = vmatprep.subr.mxu1 %v2870_v10 }
 0x312   : > { %1092 = vmatpush1.msra.mxu1 %v2875_v11 }
 0x313   : > { %1093 = vmatprep.subr.mxu1 %v2862_v8 }
 0x314   : > { %1094 = vmatpush1.msra.mxu1 %v3840_v57 }
 0x315   : > { %1095 = vmatprep.subr.mxu1 %v3841_v46 }
 0x316   : > { %1096 = vmatpush1.msra.mxu1 %v3842_v37 }
 0x317   : > { %1097 = vmatprep.subr.mxu1 %v3843_v43 }
 0x318   : > { %1098 = vmatpush1.msra.mxu1 %v3844_v51 }
 0x319   : > { %1099 = vmatprep.subr.mxu1 %v3845_v2 }
 0x31a   : > { %1100 = vmatpush1.msra.mxu1 %v3846_v38 }
 0x3bb   : > { %v1031_v40 = vpop.f32.mrf.mxu1 }
 0x3bc   : > { %v1065_v55 = vrot.slane %v1031_v40, 7 }
 0x3bd   : > { %v2362_v56 = vpop.f32.mrf.mxu1 }
 0x3be   : > { %v1068_v1 = vsel %vm1067_vm3, %v457_v54, %v1065_v55 }
 0x3bf   : > { %1134 = vmatmul.mubr.f32.vlgmr.msra.gmra.mxu1 %v1068_v1 }
 0x47f   : > { %v3157_v35 = vpop.f32.mrf.mxu1 }
 0x480   : > { %v1149_v6 = vadd.f32 %v1148_v61, %v3157_v35 }
 0x481   : > { %v3160_v39 = vpop.f32.mrf.mxu1 }
 0x482   : > { %v1150_v42 = vadd.f32 %v1148_v61, %v3160_v39  ;;  %v1158_v44 = vsel %vm1067_vm3, %v1149_v6, -inf }
 0x484   : > { %v1159_v45 = vsel %vm1067_vm3, %v1150_v42, -inf }
 0x485   : > { %v1160_v47 = vmax.f32 %v1158_v44, %v1159_v45 }
 0x487   : > { %1161 = vmax.xlane.f32.xlu1 %v1160_v47 }
 0x510   : > { %v1162_v58 = vpop.xlane.xlu1 %1161 }
 0x511   : > { %v1163_v48 = vsub.f32 %v1149_v6, %v1162_v58  ;;  %v1164_v36 = vsub.f32 %v1150_v42, %v1162_v58 }
 0x513   : > { %v1165_v62 = vmul.f32 1.442695, %v1163_v48  ;;  %v1167_v3 = vmul.f32 1.442695, %v1164_v36 }
 0x515   : > { %2528 = vpow2.f32 %v1165_v62 }
 0x516   : > { %2530 = vpow2.f32 %v1167_v3 }
 0x522   : > { %v2529_v34 = vpop.eup %2528 }
 0x523   : > { %v2531_v60 = vpop.eup %2530  ;;  %v1169_v4 = vsel %vm1067_vm3, %v2529_v34, 0.0 }
 0x524   : > { %v1170_v7 = vsel %vm1067_vm3, %v2531_v60, 0.0 }
 0x525   : > { %v1171_v50 = vadd.f32 %v1170_v7, %v1169_v4 }
 0x527   : > { %1172 = vadd.xlane.f32.xlu0 %v1171_v50 }
 0x5b0   : > { %v1173_v41 = vpop.xlane.xlu0 %1172 }
 0x5b1   : > { %2532 = vrcp.f32 %v1173_v41 }
 0x5be   : > { %v2533_v49 = vpop.eup %2532 }
 0x5bf   : > { %v1175_v2 = vmul.f32 %v2533_v49, %v2529_v34  ;;  %v1176_v0 = vmul.f32 %v2533_v49, %v2531_v60 }
 0x5c1   : > { %v3167_v52 = vrot.slane %v1175_v2, %v1147_v53  ;;  %v3169_v40 = vrot.slane %v1176_v0, %v1147_v53  ;;  %v2608_v2 = vld [vmem:[%s2836_s25 + $0x8] sm:$0xff] }
 0x5c3   : > { %v1215_v54 = vmul.f32 %v3167_v52, %v2963_v33  ;;  %v1216_v55 = vmul.f32 %v3169_v40, %v2958_v32  ;;  %v1195_v56 = vmul.f32 %v3167_v52, %v2883_v13  ;;  %v1196_v1 = vmul.f32 %v3169_v40, %v2878_v12 }
 0x5c4   : > { %v1213_v5 = vmul.f32 %v3167_v52, %v2955_v31  ;;  %v1214_v59 = vmul.f32 %v3169_v40, %v2950_v30  ;;  %v1191_v33 = vmul.f32 %v3167_v52, %v3840_v57  ;;  %v1192_v32 = vmul.f32 %v3169_v40, %v2862_v8 }
 0x5c5   : > { %v1262_v53 = vadd.f32 %v1216_v55, %v1215_v54  ;;  %v1232_v61 = vadd.f32 %v1196_v1, %v1195_v56  ;;  %v1211_v13 = vmul.f32 %v3167_v52, %v2947_v29  ;;  %v1212_v12 = vmul.f32 %v3169_v40, %v2942_v28 }
 0x5c6   : > { %v1259_v31 = vadd.f32 %v1214_v59, %v1213_v5  ;;  %v1226_v6 = vadd.f32 %v1192_v32, %v1191_v33  ;;  %v1187_v30 = vmul.f32 %v3167_v52, %v3844_v51  ;;  %v1188_v42 = vmul.f32 %v3169_v40, %v3843_v43 }
 0x5c7   : > { %1263 = vadd.xlane.f32.xlu1 %v1262_v53  ;;  %1233 = vadd.xlane.f32.xlu0 %v1232_v61  ;;  %v1256_v57 = vadd.f32 %v1212_v12, %v1211_v13  ;;  %v1209_v44 = vmul.f32 %v3167_v52, %v2939_v27  ;;  %v1210_v29 = vmul.f32 %v3169_v40, %v2934_v26  ;;  %v1058_v28 = vrot.slane %v3115_v9, 4  ;;  %v442_v12 = vld [vmem:[%s3802_s1 + $0x8] sm:$0xff] }
 0x5c8   : > { %v1220_v8 = vadd.f32 %v1188_v42, %v1187_v30  ;;  %v1207_v51 = vmul.f32 %v3167_v52, %v2931_v25  ;;  %v1208_v43 = vmul.f32 %v3169_v40, %v2926_v24  ;;  %v1205_v27 = vmul.f32 %v3167_v52, %v2923_v23  ;;  %v445_v30 = vld [vmem:[%s3802_s1 + $0x20] sm:$0xff]  ;;  %v446_v42 = vld [vmem:[%s3802_s1 + $0x28] sm:$0xff] }
 0x5c9   : > { %v1253_v45 = vadd.f32 %v1210_v29, %v1209_v44  ;;  %v1059_v47 = vadd.f32 %v1058_v28, %v3115_v9  ;;  %v1206_v26 = vmul.f32 %v3169_v40, %v2918_v22  ;;  %v1203_v62 = vmul.f32 %v3167_v52, %v2915_v21  ;;  %v459_v44 = vld [vmem:[%s3806_s5] sm:$0xff] }
 0x5ca   : > { %v1250_v58 = vadd.f32 %v1208_v43, %v1207_v51  ;;  %v1204_v25 = vmul.f32 %v3169_v40, %v2910_v20  ;;  %v1201_v9 = vmul.f32 %v3167_v52, %v2907_v19  ;;  %v1202_v23 = vmul.f32 %v3169_v40, %v2902_v18  ;;  %v463_v29 = vld [vmem:[%s3806_s5 + $0x20] sm:$0xff] }
 0x5cb   : > { %1260 = vadd.xlane.f32.xlu1 %v1259_v31  ;;  %1227 = vadd.xlane.f32.xlu0 %v1226_v6  ;;  %v1060_v48 = vrot.slane %v1059_v47, 2  ;;  %v1247_v36 = vadd.f32 %v1206_v26, %v1205_v27  ;;  %v1199_v60 = vmul.f32 %v3167_v52, %v2899_v17  ;;  %v1200_v21 = vmul.f32 %v3169_v40, %v2894_v16  ;;  %v443_v31 = vld [vmem:[%s3802_s1 + $0x10] sm:$0xff]  ;;  %v444_v6 = vld [vmem:[%s3802_s1 + $0x18] sm:$0xff] }
 0x5cc   : > { %v1244_v3 = vadd.f32 %v1204_v25, %v1203_v62  ;;  %v1241_v34 = vadd.f32 %v1202_v23, %v1201_v9  ;;  %v1197_v19 = vmul.f32 %v3167_v52, %v2891_v15  ;;  %v1198_v18 = vmul.f32 %v3169_v40, %v2886_v14  ;;  %2429 = vmatprep.mubr.msk.f32.mxu1 %vm961_vm2, %v463_v29  ;;  %v456_v27 = vld [vmem:[%s3803_s2 + $0x38] sm:$0xff]  ;;  %v454_v62 = vld [vmem:[%s3803_s2 + $0x28] sm:$0xff] }
 0x5cd   : > { %v1061_v24 = vadd.f32 %v1060_v48, %v1059_v47  ;;  %v1238_v4 = vadd.f32 %v1200_v21, %v1199_v60  ;;  %v1193_v50 = vmul.f32 %v3167_v52, %v2875_v11  ;;  %v1194_v17 = vmul.f32 %v3169_v40, %v2870_v10  ;;  %v441_v10 = vld [vmem:[%s3802_s1] sm:$0xff]  ;;  %v455_v48 = vld [vmem:[%s3803_s2 + $0x30] sm:$0xff]  ;;  %v452_v23 = vld [vmem:[%s3803_s2 + $0x18] sm:$0xff] }
 0x5ce   : > { %v1235_v7 = vadd.f32 %v1198_v18, %v1197_v19  ;;  %v1189_v41 = vmul.f32 %v3167_v52, %v3842_v37  ;;  %v1190_v49 = vmul.f32 %v3169_v40, %v3841_v46  ;;  %v1185_v14 = vmul.f32 %v3167_v52, %v3846_v38  ;;  %2395 = vmatprep.mubr.f32.mxu0 %v441_v10  ;;  %v450_v21 = vld [vmem:[%s3803_s2 + $0x8] sm:$0xff] }
 0x5cf   : > { %1257 = vadd.xlane.f32.xlu1 %v1256_v57  ;;  %1221 = vadd.xlane.f32.xlu0 %v1220_v8  ;;  %v1062_v22 = vrot.slane %v1061_v24, 1  ;;  %v1229_v16 = vadd.f32 %v1194_v17, %v1193_v50  ;;  %v1186_v0 = vmul.f32 %v2608_v2, %v3169_v40  ;;  %v447_v57 = vld [vmem:[%s3802_s1 + $0x30] sm:$0xff]  ;;  %v448_v8 = vld [vmem:[%s3802_s1 + $0x38] sm:$0xff]  ;;  %v464_v50 = vld [vmem:[%s3806_s5 + $0x28] sm:$0xff] }
 0x5d0   : > { %v1223_v15 = vadd.f32 %v1190_v49, %v1189_v41  ;;  %v461_v17 = vld [vmem:[%s3806_s5 + $0x10] sm:$0xff]  ;;  %v462_v41 = vld [vmem:[%s3806_s5 + $0x18] sm:$0xff]  ;;  %v472_v10 = vld [vmem:[%s3806_s5 + $0x68] sm:$0xff] }
 0x5d1   : > { %v1063_v20 = vadd.f32 %v1062_v22, %v1061_v24  ;;  %v1217_v11 = vadd.f32 %v1186_v0, %v1185_v14  ;;  %v466_v49 = vld [vmem:[%s3806_s5 + $0x38] sm:$0xff]  ;;  %v468_v14 = vld [vmem:[%s3806_s5 + $0x48] sm:$0xff]  ;;  %v469_v2 = vld [vmem:[%s3806_s5 + $0x50] sm:$0xff] }
 0x5d2   : > { %v470_v0 = vld [vmem:[%s3806_s5 + $0x58] sm:$0xff] }
 0x5d3   : > { %1254 = vadd.xlane.f32.xlu1 %v1253_v45 }
 0x5d7   : > { %1251 = vadd.xlane.f32.xlu1 %v1250_v58 }
 0x5db   : > { %1248 = vadd.xlane.f32.xlu1 %v1247_v36 }
 0x5df   : > { %1245 = vadd.xlane.f32.xlu1 %v1244_v3  ;;  %v453_v3 = vld [vmem:[%s3803_s2 + $0x20] sm:$0xff] }
 0x5e3   : > { %1242 = vadd.xlane.f32.xlu1 %v1241_v34  ;;  %v451_v34 = vld [vmem:[%s3803_s2 + $0x10] sm:$0xff] }
 0x5e5   : > { %1153 = vperm.xlu0 %2509, %v1063_v20  }
 0x5e7   : > { %1239 = vadd.xlane.f32.xlu1 %v1238_v4  ;;  %v449_v4 = vld [vmem:[%s3803_s2] sm:$0xff] }
 0x5eb   : > { %1236 = vadd.xlane.f32.xlu1 %v1235_v7  ;;  %v460_v7 = vld [vmem:[%s3806_s5 + $0x8] sm:$0xff] }
 0x5ef   : > { %1230 = vadd.xlane.f32.xlu1 %v1229_v16  ;;  %v465_v16 = vld [vmem:[%s3806_s5 + $0x30] sm:$0xff] }
 0x5f3   : > { %1224 = vadd.xlane.f32.xlu1 %v1223_v15  ;;  %v467_v15 = vld [vmem:[%s3806_s5 + $0x40] sm:$0xff] }
 0x5f7   : > { %1218 = vadd.xlane.f32.xlu1 %v1217_v11  ;;  %v471_v11 = vld [vmem:[%s3806_s5 + $0x60] sm:$0xff] }
 0x650   : > { %v1264_v37 = vpop.xlane.xlu1 %1263  ;;  %v1234_v5 = vpop.xlane.xlu0 %1233 }
 0x651   : > { %2363 = vmatprep.subr.mxu0 %v1264_v37 }
 0x652   : > { %2364 = vmatpush3.msra.mxu0 %v1264_v37  ;;  %v473_v37 = vld [vmem:[%s3806_s5 + $0x70] sm:$0xff] }
 0x654   : > { %v1261_v46 = vpop.xlane.xlu1 %1260  ;;  %v1228_v53 = vpop.xlane.xlu0 %1227 }
 0x655   : > { %2365 = vmatprep.subr.mxu0 %v1261_v46 }
 0x656   : > { %2366 = vmatpush3.msra.mxu0 %v1261_v46  ;;  %v474_v46 = vld [vmem:[%s3806_s5 + $0x78] sm:$0xff] }
 0x658   : > { %v1258_v54 = vpop.xlane.xlu1 %1257  ;;  %v1222_v32 = vpop.xlane.xlu0 %1221 }
 0x659   : > { %2367 = vmatprep.subr.mxu0 %v1258_v54 }
 0x65a   : > { %2368 = vmatpush3.msra.mxu0 %v1258_v54  ;;  %v476_v54 = vld [vmem:[%s3807_s6 + $0x8] sm:$0xff] }
 0x65c   : > { %v1255_v38 = vpop.xlane.xlu1 %1254 }
 0x65d   : > { %2369 = vmatprep.subr.mxu0 %v1255_v38 }
 0x65e   : > { %2370 = vmatpush3.msra.mxu0 %v1255_v38 }
 0x660   : > { %v1252_v52 = vpop.xlane.xlu1 %1251 }
 0x661   : > { %2371 = vmatprep.subr.mxu0 %v1252_v52 }
 0x662   : > { %2372 = vmatpush3.msra.mxu0 %v1252_v52  ;;  %v475_v52 = vld [vmem:[%s3807_s6] sm:$0xff] }
 0x664   : > { %v1249_v40 = vpop.xlane.xlu1 %1248 }
 0x665   : > { %2373 = vmatprep.subr.mxu0 %v1249_v40 }
 0x666   : > { %2374 = vmatpush3.msra.mxu0 %v1249_v40 }
 0x668   : > { %v1246_v55 = vpop.xlane.xlu1 %1245 }
 0x669   : > { %2375 = vmatprep.subr.mxu0 %v1246_v55 }
 0x66a   : > { %2376 = vmatpush3.msra.mxu0 %v1246_v55 }
 0x66c   : > { %v1243_v56 = vpop.xlane.xlu1 %1242 }
 0x66d   : > { %2377 = vmatprep.subr.mxu0 %v1243_v56 }
 0x66e   : > { %2378 = vmatpush3.msra.mxu0 %v1243_v56 }
 0x670   : > { %v1240_v1 = vpop.xlane.xlu1 %1239 }
 0x671   : > { %2379 = vmatprep.subr.mxu0 %v1240_v1 }
 0x672   : > { %2380 = vmatpush3.msra.mxu0 %v1240_v1 }
 0x674   : > { %v1237_v59 = vpop.xlane.xlu1 %1236 }
 0x675   : > { %2381 = vmatprep.subr.mxu0 %v1237_v59 }
 0x676   : > { %2382 = vmatpush3.msra.mxu0 %v1237_v59  ;;  %v478_v59 = vld [vmem:[%s3807_s6 + $0x18] sm:$0xff] }
 0x677   : > { %2383 = vmatprep.subr.mxu0 %v1234_v5 }
 0x678   : > { %2384 = vmatpush3.msra.mxu0 %v1234_v5  ;;  %v1231_v61 = vpop.xlane.xlu1 %1230 }
 0x679   : > { %2385 = vmatprep.subr.mxu0 %v1231_v61 }
 0x67a   : > { %2386 = vmatpush3.msra.mxu0 %v1231_v61  ;;  %v477_v61 = vld [vmem:[%s3807_s6 + $0x10] sm:$0xff] }
 0x67b   : > { %2387 = vmatprep.subr.mxu0 %v1228_v53 }
 0x67c   : > { %2388 = vmatpush3.msra.mxu0 %v1228_v53  ;;  %v1225_v33 = vpop.xlane.xlu1 %1224 }
 0x67d   : > { %2389 = vmatprep.subr.mxu0 %v1225_v33 }
 0x67e   : > { %2390 = vmatpush3.msra.mxu0 %v1225_v33 }
 0x67f   : > { %2391 = vmatprep.subr.mxu0 %v1222_v32 }
 0x680   : > { %2392 = vmatpush3.msra.mxu0 %v1222_v32  ;;  %v1219_v13 = vpop.xlane.xlu1 %1218 }
 0x681   : > { %2393 = vmatprep.subr.mxu0 %v1219_v13 }
 0x682   : > { %2394 = vmatpush3.msra.mxu0 %v1219_v13 }
 0x683   : > { %2396 = vmatmul.mubr.f32.vlgmr.msra.gmra.mxu0 %v442_v12  ;;  %v479_v12 = vld [vmem:[%s3807_s6 + $0x20] sm:$0xff] }
 0x684   : > { %2398 = vmatprep.mubr.f32.mxu0 %v443_v31 }
 0x687   : > { %2399 = vmatmul.mubr.f32.gmra.mxu0 %v444_v6 }
 0x688   : > { %2401 = vmatprep.mubr.f32.mxu0 %v445_v30 }
 0x68b   : > { %2402 = vmatmul.mubr.f32.gmra.mxu0 %v446_v42 }
 0x68c   : > { %2404 = vmatprep.mubr.f32.mxu0 %v447_v57 }
 0x68f   : > { %2405 = vmatmul.mubr.f32.gmra.mxu0 %v448_v8  ;;  %v480_v8 = vld [vmem:[%s3807_s6 + $0x28] sm:$0xff] }
 0x690   : > { %2423 = vmatprep.mubr.msk.f32.mxu0 %vm961_vm2, %v459_v44 }
 0x743   : > { %v2397_v28 = vpop.f32.mrf.mxu0 }
 0x744   : > { %v1337_v19 = vadd.f32 %v2397_v28, %v450_v21 }
 0x745   : > { %v1331_v45 = vpop.f32.mrf.mxu0 }
 0x746   : > { %v1332_v18 = vadd.f32 %v1331_v45, %v449_v4 }
 0x747   : > { %v2400_v51 = vpop.f32.mrf.mxu0 }
 0x748   : > { %v1347_v60 = vadd.f32 %v2400_v51, %v452_v23  ;;  %v481_v51 = vld [vmem:[%s3807_s6 + $0x30] sm:$0xff] }
 0x749   : > { %v1341_v43 = vpop.f32.mrf.mxu0 }
 0x74a   : > { %v1342_v20 = vadd.f32 %v1341_v43, %v451_v34  ;;  %v484_v34 = vld [vmem:[%s3807_s6 + $0x48] sm:$0xff] }
 0x74b   : > { %v2403_v47 = vpop.f32.mrf.mxu0 }
 0x74c   : > { %v1357_v9 = vadd.f32 %v2403_v47, %v454_v62 }
 0x74d   : > { %v1351_v58 = vpop.f32.mrf.mxu0 }
 0x74e   : > { %v1352_v22 = vadd.f32 %v1351_v58, %v453_v3 }
 0x74f   : > { %v2406_v26 = vpop.f32.mrf.mxu0 }
 0x750   : > { %v1367_v36 = vadd.f32 %v2406_v26, %v456_v27  ;;  %v482_v26 = vld [vmem:[%s3807_s6 + $0x38] sm:$0xff] }
 0x751   : > { %v1361_v25 = vpop.f32.mrf.mxu0 }
 0x752   : > { %v1362_v24 = vadd.f32 %v1361_v25, %v455_v48  ;;  %2407 = vmatprep.subr.mxu0 %v1367_v36  ;;  %2447 = vmatprep.subr.mxu1 %v1367_v36 }
 0x753   : > { %2408 = vmatpush3.msra.mxu0 %v1367_v36  ;;  %2455 = vmatpush3.msra.mxu1 %v1367_v36 }
 0x754   : > { %2409 = vmatprep.subr.mxu0 %v1362_v24  ;;  %2448 = vmatprep.subr.mxu1 %v1362_v24 }
 0x755   : > { %2410 = vmatpush3.msra.mxu0 %v1362_v24  ;;  %2456 = vmatpush3.msra.mxu1 %v1362_v24  ;;  %v483_v24 = vld [vmem:[%s3807_s6 + $0x40] sm:$0xff] }
 0x756   : > { %2411 = vmatprep.subr.mxu0 %v1357_v9  ;;  %2449 = vmatprep.subr.mxu1 %v1357_v9 }
 0x757   : > { %2412 = vmatpush3.msra.mxu0 %v1357_v9  ;;  %2457 = vmatpush3.msra.mxu1 %v1357_v9 }
 0x758   : > { %2413 = vmatprep.subr.mxu0 %v1352_v22  ;;  %2450 = vmatprep.subr.mxu1 %v1352_v22 }
 0x759   : > { %2414 = vmatpush3.msra.mxu0 %v1352_v22  ;;  %2458 = vmatpush3.msra.mxu1 %v1352_v22 }
 0x75a   : > { %2415 = vmatprep.subr.mxu0 %v1347_v60  ;;  %2451 = vmatprep.subr.mxu1 %v1347_v60 }
 0x75b   : > { %2416 = vmatpush3.msra.mxu0 %v1347_v60  ;;  %2459 = vmatpush3.msra.mxu1 %v1347_v60 }
 0x75c   : > { %2417 = vmatprep.subr.mxu0 %v1342_v20  ;;  %2452 = vmatprep.subr.mxu1 %v1342_v20 }
 0x75d   : > { %2418 = vmatpush3.msra.mxu0 %v1342_v20  ;;  %2460 = vmatpush3.msra.mxu1 %v1342_v20 }
 0x75e   : > { %2419 = vmatprep.subr.mxu0 %v1337_v19  ;;  %2453 = vmatprep.subr.mxu1 %v1337_v19 }
 0x75f   : > { %2420 = vmatpush3.msra.mxu0 %v1337_v19  ;;  %2461 = vmatpush3.msra.mxu1 %v1337_v19  ;;  %v485_v19 = vld [vmem:[%s3807_s6 + $0x50] sm:$0xff] }
 0x760   : > { %2421 = vmatprep.subr.mxu0 %v1332_v18  ;;  %2454 = vmatprep.subr.mxu1 %v1332_v18 }
 0x761   : > { %2422 = vmatpush3.msra.mxu0 %v1332_v18  ;;  %2462 = vmatpush3.msra.mxu1 %v1332_v18 }
 0x762   : > { %2424 = vmatmul.mubr.msk.f32.vlgmr.msra.gmra.mxu0 %vm961_vm2, %v460_v7  ;;  %2430 = vmatmul.mubr.msk.f32.vlgmr.msra.gmra.mxu1 %vm961_vm2, %v464_v50 }
 0x763   : > { %2426 = vmatprep.mubr.msk.f32.mxu0 %vm961_vm2, %v461_v17  ;;  %2432 = vmatprep.mubr.msk.f32.mxu1 %vm961_vm2, %v465_v16  ;;  %v486_v16 = vld [vmem:[%s3807_s6 + $0x58] sm:$0xff] }
 0x766   : > { %2427 = vmatmul.mubr.msk.f32.gmra.mxu0 %vm961_vm2, %v462_v41  ;;  %2433 = vmatmul.mubr.msk.f32.gmra.mxu1 %vm961_vm2, %v466_v49 }
 0x767   : > { %2435 = vmatprep.mubr.msk.f32.mxu1 %vm961_vm2, %v467_v15 }
 0x76a   : > { %2436 = vmatmul.mubr.msk.f32.gmra.mxu1 %vm961_vm2, %v468_v14  ;;  %v487_v14 = vld [vmem:[%s3807_s6 + $0x60] sm:$0xff] }
 0x76b   : > { %2438 = vmatprep.mubr.msk.f32.mxu1 %vm961_vm2, %v469_v2 }
 0x76e   : > { %2439 = vmatmul.mubr.msk.f32.gmra.mxu1 %vm961_vm2, %v470_v0 }
 0x76f   : > { %2441 = vmatprep.mubr.msk.f32.mxu1 %vm961_vm2, %v471_v11 }
 0x772   : > { %2442 = vmatmul.mubr.msk.f32.gmra.mxu1 %vm961_vm2, %v472_v10 }
 0x773   : > { %2444 = vmatprep.mubr.msk.f32.mxu1 %vm961_vm2, %v473_v37  ;;  %v488_v37 = vld [vmem:[%s3807_s6 + $0x68] sm:$0xff] }
 0x776   : > { %2445 = vmatmul.mubr.msk.f32.gmra.mxu1 %vm961_vm2, %v474_v46 }
 0x822   : > { %v2425_v38 = vpop.f32.mrf.mxu0  ;;  %v2431_v40 = vpop.f32.mrf.mxu1 }
 0x823   : > { %v3355_v1 = vadd.f32 %v2425_v38, %v476_v54  ;;  %v3388_v58 = vadd.f32 %v2431_v40, %v480_v8  ;;  %v489_v40 = vld [vmem:[%s3807_s6 + $0x70] sm:$0xff] }
 0x824   : > { %v1484_v55 = vpop.f32.mrf.mxu0  ;;  %v1504_v56 = vpop.f32.mrf.mxu1 }
 0x825   : > { %v3357_v5 = vadd.f32 %v1484_v55, %v475_v52  ;;  %v1564_v6 = vsel %vm853_vm1, %v3355_v1, 0.0  ;;  %v3381_v28 = vadd.f32 %v1504_v56, %v479_v12  ;;  %v1572_v9 = vsel %vm853_vm1, %v3388_v58, 0.0 }
 0x826   : > { %v2428_v53 = vpop.f32.mrf.mxu0  ;;  %v2434_v33 = vpop.f32.mrf.mxu1 }
 0x827   : > { %v1563_v32 = vsel %vm853_vm1, %v3357_v5, 0.0  ;;  %v3372_v30 = vadd.f32 %v2428_v53, %v478_v59  ;;  %v1570_v36 = vsel %vm853_vm1, %v3381_v28, 0.0  ;;  %v3402_v23 = vadd.f32 %v2434_v33, %v482_v26  ;;  %v490_v53 = vld [vmem:[%s3807_s6 + $0x78] sm:$0xff] }
 0x828   : > { %v1494_v13 = vpop.f32.mrf.mxu0  ;;  %v1514_v31 = vpop.f32.mrf.mxu1  ;;  %v1565_v57 = vadd.f32 %v1564_v6, %v1563_v32 }
 0x829   : > { %v3374_v42 = vadd.f32 %v1494_v13, %v477_v61  ;;  %v1568_v47 = vsel %vm853_vm1, %v3372_v30, 0.0  ;;  %v3395_v62 = vadd.f32 %v1514_v31, %v481_v51  ;;  %v1576_v7 = vsel %vm853_vm1, %v3402_v23, 0.0 }
 0x82a   : > { %v2437_v44 = vpop.f32.mrf.mxu1 }
 0x82b   : > { %v1566_v29 = vsel %vm853_vm1, %v3374_v42, 0.0  ;;  %v1574_v21 = vsel %vm853_vm1, %v3395_v62, 0.0  ;;  %v3416_v50 = vadd.f32 %v2437_v44, %v484_v34 }
 0x82c   : > { %v1567_v45 = vadd.f32 %v1566_v29, %v1565_v57  ;;  %v1524_v43 = vpop.f32.mrf.mxu1 }
 0x82d   : > { %v3409_v20 = vadd.f32 %v1524_v43, %v483_v24  ;;  %v1580_v0 = vsel %vm853_vm1, %v3416_v50, 0.0 }
 0x82e   : > { %v1569_v27 = vadd.f32 %v1568_v47, %v1567_v45  ;;  %v2440_v48 = vpop.f32.mrf.mxu1 }
 0x82f   : > { %v1578_v41 = vsel %vm853_vm1, %v3409_v20, 0.0  ;;  %v1540_v11 = vadd.f32 %v2440_v48, %v486_v16 }
 0x830   : > { %v1571_v25 = vadd.f32 %v1570_v36, %v1569_v27  ;;  %v1534_v3 = vpop.f32.mrf.mxu1 }
 0x831   : > { %v3423_v49 = vadd.f32 %v1534_v3, %v485_v19  ;;  %v1584_v55 = vsel %vm853_vm1, %v1540_v11, 0.0 }
 0x832   : > { %v1573_v22 = vadd.f32 %v1572_v9, %v1571_v25  ;;  %v2443_v60 = vpop.f32.mrf.mxu1 }
 0x833   : > { %v1582_v46 = vsel %vm853_vm1, %v3423_v49, 0.0  ;;  %v1550_v56 = vadd.f32 %v2443_v60, %v488_v37 }
 0x834   : > { %v1575_v4 = vadd.f32 %v1574_v21, %v1573_v22  ;;  %v1544_v18 = vpop.f32.mrf.mxu1 }
 0x835   : > { %v1545_v54 = vadd.f32 %v1544_v18, %v487_v14  ;;  %v1588_v13 = vsel %vm853_vm1, %v1550_v56, 0.0 }
 0x836   : > { %v1577_v17 = vadd.f32 %v1576_v7, %v1575_v4  ;;  %v2446_v2 = vpop.f32.mrf.mxu1 }
 0x837   : > { %v1586_v61 = vsel %vm853_vm1, %v1545_v54, 0.0  ;;  %v1560_v12 = vadd.f32 %v2446_v2, %v490_v53 }
 0x838   : > { %v1579_v15 = vadd.f32 %v1578_v41, %v1577_v17  ;;  %v1554_v52 = vpop.f32.mrf.mxu1 }
 0x839   : > { %v1555_v33 = vadd.f32 %v1554_v52, %v489_v40  ;;  %v1592_v8 = vsel %vm853_vm1, %v1560_v12, 0.0 }
 0x83a   : > { %v1581_v10 = vadd.f32 %v1580_v0, %v1579_v15 }
 0x83b   : > { %v1590_v6 = vsel %vm853_vm1, %v1555_v33, 0.0 }
 0x83c   : > { %v1583_v38 = vadd.f32 %v1582_v46, %v1581_v10 }
 0x83e   : > { %v1585_v59 = vadd.f32 %v1584_v55, %v1583_v38 }
 0x840   : > { %v1587_v32 = vadd.f32 %v1586_v61, %v1585_v59 }
 0x842   : > { %v1589_v31 = vadd.f32 %v1588_v13, %v1587_v32 }
 0x844   : > { %v1591_v57 = vadd.f32 %v1590_v6, %v1589_v31 }
 0x846   : > { %v1593_v44 = vadd.f32 %v1592_v8, %v1591_v57 }
 0x848   : > { %v1594_v29 = vrot.slane %v1593_v44, 4 }
 0x84a   : > { %v1595_v45 = vadd.f32 %v1594_v29, %v1593_v44 }
 0x84c   : > { %v1596_v51 = vrot.slane %v1595_v45, 2 }
 0x84e   : > { %v1597_v43 = vadd.f32 %v1596_v51, %v1595_v45 }
 0x850   : > { %v1598_v47 = vrot.slane %v1597_v43, 1 }
 0x852   : > { %v1599_v27 = vadd.f32 %v1598_v47, %v1597_v43 }
 0x854   : > { %v1601_v26 = vmul.f32 0.0078125, %v1599_v27 }
 0x856   : > { %v3447_v48 = vsub.f32 %v3357_v5, %v1601_v26  ;;  %v3450_v36 = vsub.f32 %v3355_v1, %v1601_v26  ;;  %v3453_v25 = vsub.f32 %v3374_v42, %v1601_v26  ;;  %v3456_v24 = vsub.f32 %v3372_v30, %v1601_v26 }
 0x857   : > { %v3463_v22 = vsub.f32 %v3381_v28, %v1601_v26  ;;  %v3468_v1 = vsub.f32 %v3388_v58, %v1601_v26  ;;  %v3475_v21 = vsub.f32 %v3395_v62, %v1601_v26  ;;  %v1609_v58 = vsub.f32 %v3402_v23, %v1601_v26 }
 0x858   : > { %v1618_v3 = vmul.f32 %v3447_v48, %v3447_v48  ;;  %v1619_v9 = vmul.f32 %v3450_v36, %v3450_v36  ;;  %v1620_v5 = vmul.f32 %v3453_v25, %v3453_v25  ;;  %v1621_v42 = vmul.f32 %v3456_v24, %v3456_v24 }
 0x859   : > { %v1622_v28 = vmul.f32 %v3463_v22, %v3463_v22  ;;  %v1623_v18 = vmul.f32 %v3468_v1, %v3468_v1  ;;  %v3485_v16 = vsub.f32 %v3409_v20, %v1601_v26  ;;  %v1624_v62 = vmul.f32 %v3475_v21, %v3475_v21 }
 0x85a   : > { %v1634_v30 = vsel %vm853_vm1, %v1618_v3, 0.0  ;;  %v1635_v34 = vsel %vm853_vm1, %v1619_v9, 0.0  ;;  %v1637_v4 = vsel %vm853_vm1, %v1620_v5, 0.0  ;;  %v1639_v7 = vsel %vm853_vm1, %v1621_v42, 0.0 }
 0x85b   : > { %v1636_v60 = vadd.f32 %v1635_v34, %v1634_v30  ;;  %v1641_v41 = vsel %vm853_vm1, %v1622_v28, 0.0  ;;  %v1611_v14 = vsub.f32 %v3416_v50, %v1601_v26  ;;  %v1625_v2 = vmul.f32 %v1609_v58, %v1609_v58 }
 0x85c   : > { %v1643_v23 = vsel %vm853_vm1, %v1623_v18, 0.0  ;;  %v3493_v10 = vsub.f32 %v3423_v49, %v1601_v26  ;;  %v1626_v37 = vmul.f32 %v3485_v16, %v3485_v16  ;;  %v1645_v20 = vsel %vm853_vm1, %v1624_v62, 0.0 }
 0x85d   : > { %v1638_v19 = vadd.f32 %v1637_v4, %v1636_v60  ;;  %v1613_v38 = vsub.f32 %v1540_v11, %v1601_v26  ;;  %v1627_v52 = vmul.f32 %v1611_v14, %v1611_v14  ;;  %v1647_v40 = vsel %vm853_vm1, %v1625_v2, 0.0 }
 0x85e   : > { %v3499_v59 = vsub.f32 %v1545_v54, %v1601_v26  ;;  %v1628_v50 = vmul.f32 %v3493_v10, %v3493_v10  ;;  %v1649_v53 = vsel %vm853_vm1, %v1626_v37, 0.0  ;;  %v1615_v61 = vsub.f32 %v1550_v56, %v1601_v26  ;;  %v504_v37 = vld [vmem:[%s3808_s7 + $0x68] sm:$0xff] }
 0x85f   : > { %v1640_v17 = vadd.f32 %v1639_v7, %v1638_v19  ;;  %v1629_v32 = vmul.f32 %v1613_v38, %v1613_v38  ;;  %v1651_v13 = vsel %vm853_vm1, %v1627_v52, 0.0  ;;  %v3505_v6 = vsub.f32 %v1555_v33, %v1601_v26  ;;  %v498_v7 = vld [vmem:[%s3808_s7 + $0x38] sm:$0xff] }
 0x860   : > { %v1630_v11 = vmul.f32 %v3499_v59, %v3499_v59  ;;  %v1653_v57 = vsel %vm853_vm1, %v1628_v50, 0.0  ;;  %v1617_v8 = vsub.f32 %v1560_v12, %v1601_v26  ;;  %v1631_v44 = vmul.f32 %v1615_v61, %v1615_v61 }
 0x861   : > { %v1642_v15 = vadd.f32 %v1641_v41, %v1640_v17  ;;  %v1655_v29 = vsel %vm853_vm1, %v1629_v32, 0.0  ;;  %v1632_v56 = vmul.f32 %v3505_v6, %v3505_v6  ;;  %v500_v17 = vld [vmem:[%s3808_s7 + $0x48] sm:$0xff] }
 0x862   : > { %v1657_v51 = vsel %vm853_vm1, %v1630_v11, 0.0  ;;  %v1633_v47 = vmul.f32 %v1617_v8, %v1617_v8  ;;  %v1659_v33 = vsel %vm853_vm1, %v1631_v44, 0.0 }
 0x863   : > { %v1644_v0 = vadd.f32 %v1643_v23, %v1642_v15  ;;  %v1661_v3 = vsel %vm853_vm1, %v1632_v56, 0.0  ;;  %v502_v15 = vld [vmem:[%s3808_s7 + $0x58] sm:$0xff]  ;;  %v508_v56 = vld [vmem:[%s3809_s8 + $0x8] sm:$0xff] }
 0x864   : > { %v1663_v5 = vsel %vm853_vm1, %v1633_v47, 0.0  ;;  %v514_v23 = vld [vmem:[%s3809_s8 + $0x38] sm:$0xff] }
 0x865   : > { %v1646_v46 = vadd.f32 %v1645_v20, %v1644_v0 }
 0x867   : > { %v1648_v55 = vadd.f32 %v1647_v40, %v1646_v46 }
 0x869   : > { %v1650_v49 = vadd.f32 %v1649_v53, %v1648_v55 }
 0x86b   : > { %v1652_v31 = vadd.f32 %v1651_v13, %v1650_v49  ;;  %v506_v49 = vld [vmem:[%s3808_s7 + $0x78] sm:$0xff] }
 0x86d   : > { %v1654_v54 = vadd.f32 %v1653_v57, %v1652_v31  ;;  %v491_v31 = vld [vmem:[%s3808_s7] sm:$0xff]  ;;  %v492_v57 = vld [vmem:[%s3808_s7 + $0x8] sm:$0xff] }
 0x86f   : > { %v1656_v45 = vadd.f32 %v1655_v29, %v1654_v54 }
 0x871   : > { %v1658_v43 = vadd.f32 %v1657_v51, %v1656_v45 }
 0x873   : > { %v1660_v27 = vadd.f32 %v1659_v33, %v1658_v43  ;;  %v509_v33 = vld [vmem:[%s3809_s8 + $0x10] sm:$0xff] }
 0x875   : > { %v1662_v9 = vadd.f32 %v1661_v3, %v1660_v27  ;;  %v494_v3 = vld [vmem:[%s3808_s7 + $0x18] sm:$0xff] }
 0x877   : > { %v1664_v12 = vadd.f32 %v1663_v5, %v1662_v9 }
 0x879   : > { %v1665_v26 = vrot.slane %v1664_v12, 4 }
 0x87b   : > { %v1666_v42 = vadd.f32 %v1665_v26, %v1664_v12 }
 0x87d   : > { %v1667_v30 = vrot.slane %v1666_v42, 2 }
 0x87f   : > { %v1668_v34 = vadd.f32 %v1667_v30, %v1666_v42 }
 0x881   : > { %v1669_v60 = vrot.slane %v1668_v34, 1 }
 0x883   : > { %v1670_v28 = vadd.f32 %v1669_v60, %v1668_v34  ;;  %v495_v60 = vld [vmem:[%s3808_s7 + $0x20] sm:$0xff] }
 0x885   : > { %v1671_v4 = vmul.f32 0.0078125, %v1670_v28 }
 0x887   : > { %v1672_v19 = vadd.f32 1e-05, %v1671_v4  ;;  %v510_v4 = vld [vmem:[%s3809_s8 + $0x18] sm:$0xff] }
 0x889   : > { %2534 = vrsqrt.f32 %v1672_v19 }
 0x896   : > { %v3517_v18 = vpop.eup %2534 }
 0x897   : > { %v1681_v62 = vmul.f32 %v3517_v18, %v1609_v58  ;;  %v1683_v41 = vmul.f32 %v3517_v18, %v1611_v14  ;;  %v1685_v2 = vmul.f32 %v3517_v18, %v1613_v38  ;;  %v1687_v0 = vmul.f32 %v3517_v18, %v1615_v61  ;;  %v516_v58 = vld [vmem:[%s3809_s8 + $0x48] sm:$0xff]  ;;  %v518_v14 = vld [vmem:[%s3809_s8 + $0x58] sm:$0xff] }
 0x898   : > { %v1689_v40 = vmul.f32 %v3517_v18, %v1617_v8  ;;  %v520_v61 = vld [vmem:[%s3809_s8 + $0x68] sm:$0xff]  ;;  %v1676_v32 = vmul.f32 %v3517_v18, %v3453_v25  ;;  %v1674_v11 = vmul.f32 %v3517_v18, %v3447_v48  ;;  %v1675_v8 = vmul.f32 %v3517_v18, %v3450_v36  ;;  %v493_v25 = vld [vmem:[%s3808_s7 + $0x10] sm:$0xff]  ;;  %v507_v48 = vld [vmem:[%s3809_s8] sm:$0xff] }
 0x899   : > { %v1697_v20 = vmul.f32 %v1681_v62, %v498_v7  ;;  %v1699_v46 = vmul.f32 %v1683_v41, %v500_v17  ;;  %v1701_v38 = vmul.f32 %v1685_v2, %v502_v15  ;;  %v1703_v55 = vmul.f32 %v1687_v0, %v504_v37  ;;  %v522_v36 = vld [vmem:[%s3809_s8 + $0x78] sm:$0xff]  ;;  %v496_v7 = vld [vmem:[%s3808_s7 + $0x28] sm:$0xff]  ;;  %v511_v15 = vld [vmem:[%s3809_s8 + $0x20] sm:$0xff] }
 0x89a   : > { %v1705_v44 = vmul.f32 %v1689_v40, %v506_v49  ;;  %v1677_v51 = vmul.f32 %v3517_v18, %v3456_v24  ;;  %v1690_v43 = vmul.f32 %v1674_v11, %v491_v31  ;;  %v1691_v47 = vmul.f32 %v1675_v8, %v492_v57  ;;  %v512_v0 = vld [vmem:[%s3809_s8 + $0x28] sm:$0xff]  ;;  %v499_v40 = vld [vmem:[%s3808_s7 + $0x40] sm:$0xff] }
 0x89b   : > { %v1713_v52 = vadd.f32 %v1697_v20, %v514_v23  ;;  %v1715_v50 = vadd.f32 %v1699_v46, %v516_v58  ;;  %v1717_v53 = vadd.f32 %v1701_v38, %v518_v14  ;;  %v1719_v29 = vadd.f32 %v1703_v55, %v520_v61  ;;  %v513_v55 = vld [vmem:[%s3809_s8 + $0x30] sm:$0xff] }
 0x89c   : > { %v1692_v27 = vmul.f32 %v1676_v32, %v493_v25  ;;  %v1706_v9 = vadd.f32 %v1690_v43, %v507_v48  ;;  %v1707_v5 = vadd.f32 %v1691_v47, %v508_v56  ;;  %v1721_v12 = vadd.f32 %v1705_v44, %v522_v36  ;;  %v517_v43 = vld [vmem:[%s3809_s8 + $0x50] sm:$0xff] }
 0x89d   : > { %v2121_v13 = vmul.f32 -1.442695, %v1713_v52  ;;  %v2123_v54 = vmul.f32 -1.442695, %v1715_v50  ;;  %v2125_v45 = vmul.f32 -1.442695, %v1717_v53  ;;  %v1678_v24 = vmul.f32 %v3517_v18, %v3463_v22 }
 0x89e   : > { %v2127_v26 = vmul.f32 -1.442695, %v1719_v29  ;;  %v2114_v42 = vmul.f32 -1.442695, %v1706_v9  ;;  %v1708_v30 = vadd.f32 %v1692_v27, %v509_v33  ;;  %v1693_v34 = vmul.f32 %v1677_v51, %v494_v3  ;;  %v503_v51 = vld [vmem:[%s3808_s7 + $0x60] sm:$0xff] }
 0x89f   : > { %2536 = vpow2.f32 %v2121_v13  ;;  %v2115_v28 = vmul.f32 -1.442695, %v1707_v5  ;;  %v1679_v19 = vmul.f32 %v3517_v18, %v3468_v1  ;;  %v2129_v22 = vmul.f32 -1.442695, %v1721_v12  ;;  %v497_v1 = vld [vmem:[%s3808_s7 + $0x30] sm:$0xff] }
 0x8a0   : > { %2538 = vpow2.f32 %v2123_v54  ;;  %v1694_v17 = vmul.f32 %v1678_v24, %v495_v60  ;;  %v2116_v62 = vmul.f32 -1.442695, %v1708_v30  ;;  %v1709_v41 = vadd.f32 %v1693_v34, %v510_v4  ;;  %v501_v54 = vld [vmem:[%s3808_s7 + $0x50] sm:$0xff]  ;;  %v519_v24 = vld [vmem:[%s3809_s8 + $0x60] sm:$0xff] }
 0x8a1   : > { %2540 = vpow2.f32 %v2125_v45  ;;  %v1680_v2 = vmul.f32 %v3517_v18, %v3475_v21  ;;  %v1695_v23 = vmul.f32 %v1679_v19, %v496_v7  ;;  %v1682_v38 = vmul.f32 %v3517_v18, %v3485_v16  ;;  %v515_v16 = vld [vmem:[%s3809_s8 + $0x40] sm:$0xff] }
 0x8a2   : > { %2542 = vpow2.f32 %v2127_v26  ;;  %v2117_v58 = vmul.f32 -1.442695, %v1709_v41  ;;  %v1710_v14 = vadd.f32 %v1694_v17, %v511_v15  ;;  %v1684_v31 = vmul.f32 %v3517_v18, %v3493_v10  ;;  %v505_v26 = vld [vmem:[%s3808_s7 + $0x70] sm:$0xff] }
 0x8a3   : > { %2544 = vpow2.f32 %v2114_v42  ;;  %v1696_v21 = vmul.f32 %v1680_v2, %v497_v1  ;;  %v1711_v52 = vadd.f32 %v1695_v23, %v512_v0  ;;  %v1698_v61 = vmul.f32 %v1682_v38, %v499_v40 }
 0x8a4   : > { %2546 = vpow2.f32 %v2115_v28  ;;  %v2118_v49 = vmul.f32 -1.442695, %v1710_v14  ;;  %v1686_v48 = vmul.f32 %v3517_v18, %v3499_v59  ;;  %v1700_v56 = vmul.f32 %v1684_v31, %v501_v54  ;;  %v521_v28 = vld [vmem:[%s3809_s8 + $0x70] sm:$0xff]  ;;  %v1154_v54 = vpop.permute.xlu0 %1153 }
 0x8a5   : > { %2548 = vpow2.f32 %v2129_v22  ;;  %v1712_v32 = vadd.f32 %v1696_v21, %v513_v55  ;;  %v2119_v13 = vmul.f32 -1.442695, %v1711_v52  ;;  %v1714_v44 = vadd.f32 %v1698_v61, %v515_v16 }
 0x8a6   : > { %2550 = vpow2.f32 %v2116_v62  ;;  %v1688_v27 = vmul.f32 %v3517_v18, %v3505_v6  ;;  %v1702_v59 = vmul.f32 %v1686_v48, %v503_v51  ;;  %v1716_v9 = vadd.f32 %v1700_v56, %v517_v43 }
 0x8a7   : > { %v2120_v29 = vmul.f32 -1.442695, %v1712_v32  ;;  %v2122_v3 = vmul.f32 -1.442695, %v1714_v44  ;;  %v1912_v51 = vsub.s32 1, %v3154_v63 }
 0x8a8   : > { %v1704_v6 = vmul.f32 %v1688_v27, %v505_v26  ;;  %v1718_v18 = vadd.f32 %v1702_v59, %v519_v24  ;;  %v2124_v34 = vmul.f32 -1.442695, %v1716_v9  ;;  %v2610_v9 = vld [vmem:[%s2836_s25 + $0x78] sm:$0xff]  ;;  %v2611_v24 = vld [vmem:[%s2836_s25 + $0x90] sm:$0xff] }
 0x8aa   : > { %v1720_v22 = vadd.f32 %v1704_v6, %v521_v28  ;;  %v2126_v17 = vmul.f32 -1.442695, %v1718_v18 }
 0x8ac   : > { %v2537_v37 = vpop.eup %2536  ;;  %v2128_v23 = vmul.f32 -1.442695, %v1720_v22 }
 0x8ad   : > { %v1777_v20 = vadd.f32 1.0, %v2537_v37  ;;  %v2539_v46 = vpop.eup %2538 }
 0x8ae   : > { %v1779_v50 = vadd.f32 1.0, %v2539_v46  ;;  %v2541_v53 = vpop.eup %2540 }
 0x8af   : > { %2552 = vrcp.f32 %v1777_v20  ;;  %v1781_v11 = vadd.f32 1.0, %v2541_v53  ;;  %v2543_v57 = vpop.eup %2542 }
 0x8b0   : > { %2554 = vpow2.f32 %v2117_v58  ;;  %v2545_v8 = vpop.eup %2544  ;;  %v1783_v36 = vadd.f32 1.0, %v2543_v57 }
 0x8b1   : > { %2556 = vrcp.f32 %v1779_v50  ;;  %v2547_v25 = vpop.eup %2546  ;;  %v1770_v45 = vadd.f32 1.0, %v2545_v8  ;;  %v1156_v8 = vadd.f32 %v1154_v54, %v3157_v35 }
 0x8b2   : > { %2558 = vpow2.f32 %v2118_v49  ;;  %v2549_v10 = vpop.eup %2548  ;;  %v1771_v47 = vadd.f32 1.0, %v2547_v25  ;;  %v1157_v25 = vadd.f32 %v1154_v54, %v3160_v39  ;;  %v2622_v54 = vld [vmem:[%s2836_s25 + $0xf8] sm:$0xff] }
 0x8b3   : > { %2560 = vpow2.f32 %v2119_v13  ;;  %v2551_v33 = vpop.eup %2550  ;;  %v1785_v5 = vadd.f32 1.0, %v2549_v10  ;;  %v2130_v44 = vmul.f32 -1.442695, %v1156_v8 }
 0x8b4   : > { %2562 = vrcp.f32 %v1781_v11  ;;  %v1772_v42 = vadd.f32 1.0, %v2551_v33 }
 0x8b5   : > { %2564 = vrcp.f32 %v1770_v45 }
 0x8b6   : > { %2566 = vpow2.f32 %v2120_v29  ;;  %v2131_v29 = vmul.f32 -1.442695, %v1157_v25  ;;  %v2623_v25 = vld [vmem:[%s2836_s25 + $0x20] sm:$0xff] }
 0x8b7   : > { %2568 = vrcp.f32 %v1783_v36 }
 0x8b8   : > { %2570 = vrcp.f32 %v1771_v47 }
 0x8b9   : > { %2572 = vpow2.f32 %v2122_v3  ;;  %v2609_v3 = vld [vmem:[%s2836_s25 + $0x70] sm:$0xff] }
 0x8ba   : > { %2574 = vrcp.f32 %v1785_v5 }
 0x8bb   : > { %2576 = vrcp.f32 %v1772_v42 }
 0x8bc   : > { %v2553_v12 = vpop.eup %2552  ;;  %2578 = vpow2.f32 %v2124_v34 }
 0x8bd   : > { %v2555_v30 = vpop.eup %2554  ;;  %1867 = vperm.xlu0 %2509, %v2553_v12  }
 0x8be   : > { %v2557_v60 = vpop.eup %2556  ;;  %v1773_v4 = vadd.f32 1.0, %v2555_v30  ;;  %v2612_v30 = vld [vmem:[%s2836_s25 + $0x98] sm:$0xff] }
 0x8bf   : > { %v2559_v19 = vpop.eup %2558 }
 0x8c0   : > { %v2561_v7 = vpop.eup %2560  ;;  %2580 = vrcp.f32 %v1773_v4  ;;  %v1774_v41 = vadd.f32 1.0, %v2559_v19 }
 0x8c1   : > { %1877 = vperm.xlu0 %2509, %v2557_v60   ;;  %v2563_v62 = vpop.eup %2562  ;;  %2582 = vpow2.f32 %v2126_v17  ;;  %v1775_v0 = vadd.f32 1.0, %v2561_v7  ;;  %v2613_v7 = vld [vmem:[%s2836_s25 + $0xb0] sm:$0xff]  ;;  %v2614_v17 = vld [vmem:[%s2836_s25 + $0xb8] sm:$0xff] }
 0x8c2   : > { %v2565_v15 = vpop.eup %2564  ;;  %2584 = vrcp.f32 %v1774_v41  ;;  %v2615_v41 = vld [vmem:[%s2836_s25] sm:$0xff] }
 0x8c3   : > { %1832 = vperm.xlu1 %2508, %v2565_v15   ;;  %v2567_v2 = vpop.eup %2566  ;;  %2586 = vpow2.f32 %v2128_v23 }
 0x8c4   : > { %v2569_v1 = vpop.eup %2568  ;;  %2588 = vrcp.f32 %v1775_v0  ;;  %v1776_v20 = vadd.f32 1.0, %v2567_v2  ;;  %v2616_v2 = vld [vmem:[%s2836_s25 + $0x8] sm:$0xff] }
 0x8c5   : > { %1887 = vperm.xlu0 %2509, %v2563_v62   ;;  %v2571_v37 = vpop.eup %2570 }
 0x8c6   : > { %v2573_v58 = vpop.eup %2572  ;;  %2590 = vrcp.f32 %v1776_v20 }
 0x8c7   : > { %1837 = vperm.xlu1 %2508, %v2571_v37   ;;  %v2575_v14 = vpop.eup %2574  ;;  %v1778_v21 = vadd.f32 1.0, %v2573_v58 }
 0x8c8   : > { %v2577_v46 = vpop.eup %2576 }
 0x8c9   : > { %1897 = vperm.xlu0 %2509, %v2569_v1   ;;  %v2579_v38 = vpop.eup %2578  ;;  %2592 = vrcp.f32 %v1778_v21  ;;  %v2618_v21 = vld [vmem:[%s2836_s25 + $0xd8] sm:$0xff] }
 0x8ca   : > { %v1780_v55 = vadd.f32 1.0, %v2579_v38 }
 0x8cb   : > { %1842 = vperm.xlu1 %2508, %v2577_v46   ;;  %v2617_v46 = vld [vmem:[%s2836_s25 + $0xd0] sm:$0xff] }
 0x8cc   : > { %2594 = vrcp.f32 %v1780_v55 }
 0x8cd   : > { %1907 = vperm.xlu0 %2509, %v2575_v14   ;;  %v2581_v52 = vpop.eup %2580 }
 0x8ce   : > { %v2583_v40 = vpop.eup %2582 }
 0x8cf   : > { %1847 = vperm.xlu1 %2508, %v2581_v52   ;;  %v2585_v50 = vpop.eup %2584  ;;  %v1782_v49 = vadd.f32 1.0, %v2583_v40  ;;  %v2619_v40 = vld [vmem:[%s2836_s25 + $0x10] sm:$0xff] }
 0x8d0   : > { %v2587_v53 = vpop.eup %2586 }
 0x8d1   : > { %v2589_v61 = vpop.eup %2588  ;;  %v1784_v32 = vadd.f32 1.0, %v2587_v53  ;;  %2596 = vrcp.f32 %v1782_v49 }
 0x8d3   : > { %1852 = vperm.xlu1 %2508, %v2585_v50   ;;  %v2591_v13 = vpop.eup %2590  ;;  %2598 = vrcp.f32 %v1784_v32  ;;  %v2620_v50 = vld [vmem:[%s2836_s25 + $0x18] sm:$0xff] }
 0x8d4   : > { %2600 = vpow2.f32 %v2130_v44 }
 0x8d5   : > { %2602 = vpow2.f32 %v2131_v29  ;;  %v2624_v29 = vld [vmem:[%s2836_s25 + $0x28] sm:$0xff] }
 0x8d6   : > { %v2593_v16 = vpop.eup %2592 }
 0x8d7   : > { %1857 = vperm.xlu1 %2508, %v2589_v61  }
 0x8d9   : > { %v2595_v31 = vpop.eup %2594 }
 0x8db   : > { %1862 = vperm.xlu1 %2508, %v2591_v13  }
 0x8de   : > { %v2597_v11 = vpop.eup %2596 }
 0x8df   : > { %1872 = vperm.xlu1 %2508, %v2593_v16  }
 0x8e0   : > { %v2599_v57 = vpop.eup %2598 }
 0x8e1   : > { %v2601_v45 = vpop.eup %2600 }
 0x8e2   : > { %v2603_v48 = vpop.eup %2602  ;;  %v1824_v56 = vadd.f32 1.0, %v2601_v45 }
 0x8e3   : > { %1882 = vperm.xlu1 %2508, %v2595_v31   ;;  %v1825_v36 = vadd.f32 1.0, %v2603_v48 }
 0x8e4   : > { %2604 = vrcp.f32 %v1824_v56 }
 0x8e5   : > { %2606 = vrcp.f32 %v1825_v36 }
 0x8e7   : > { %1892 = vperm.xlu1 %2508, %v2597_v11   ;;  %v2621_v11 = vld [vmem:[%s2836_s25 + $0xf0] sm:$0xff] }
 0x8eb   : > { %1902 = vperm.xlu1 %2508, %v2599_v57  }
 0x8f1   : > { %v2605_v10 = vpop.eup %2604 }
 0x8f2   : > { %v2607_v43 = vpop.eup %2606  ;;  %v3646_v35 = vrot.slane %v2605_v10, %v1912_v51  ;;  %v2625_v10 = vld [vmem:[%s2836_s25 + $0x30] sm:$0xff] }
 0x8f3   : > { %v3648_v39 = vrot.slane %v2607_v43, %v1912_v51  ;;  %v2626_v43 = vld [vmem:[%s2836_s25 + $0x38] sm:$0xff] }
 0x938   : > { %v1868_v47 = vpop.permute.xlu0 %1867 }
 0x939   : > { %v1932_v33 = vadd.f32 %v3646_v35, %v1868_v47  ;;  %v1933_v27 = vadd.f32 %v3648_v39, %v1868_v47 }
 0x93b   : > { %v1964_v59 = vmul.f32 %v2609_v3, %v1932_v33  ;;  %v1965_v5 = vmul.f32 %v2610_v9, %v1933_v27 }
 0x93c   : > { %v1878_v63 = vpop.permute.xlu0 %1877 }
 0x93d   : > { %1996 = vst [vmem:[%s3656_s26 + $0x70] sm:$0xff] %v1964_v59  ;;  %1997 = vst [vmem:[%s3656_s26 + $0x78] sm:$0xff] %v1965_v5  ;;  %v1936_v12 = vadd.f32 %v3646_v35, %v1878_v63  ;;  %v1937_v26 = vadd.f32 %v3648_v39, %v1878_v63  ;;  %v2627_v59 = vld [vmem:[%s2836_s25 + $0x40] sm:$0xff]  ;;  %v2628_v5 = vld [vmem:[%s2836_s25 + $0x48] sm:$0xff] }
 0x93e   : > { %v1833_v34 = vpop.permute.xlu1 %1832 }
 0x93f   : > { %v1968_v42 = vmul.f32 %v2611_v24, %v1936_v12  ;;  %v1969_v6 = vmul.f32 %v2612_v30, %v1937_v26  ;;  %v1918_v4 = vadd.f32 %v3646_v35, %v1833_v34  ;;  %v1919_v19 = vadd.f32 %v3648_v39, %v1833_v34 }
 0x940   : > { %v1888_v18 = vpop.permute.xlu0 %1887 }
 0x941   : > { %2000 = vst [vmem:[%s3656_s26 + $0x90] sm:$0xff] %v1968_v42  ;;  %2001 = vst [vmem:[%s3656_s26 + $0x98] sm:$0xff] %v1969_v6  ;;  %v1940_v60 = vadd.f32 %v3646_v35, %v1888_v18  ;;  %v1941_v28 = vadd.f32 %v3648_v39, %v1888_v18  ;;  %v1950_v15 = vmul.f32 %v2615_v41, %v1918_v4  ;;  %v2629_v42 = vld [vmem:[%s2836_s25 + $0x50] sm:$0xff]  ;;  %v2630_v6 = vld [vmem:[%s2836_s25 + $0x58] sm:$0xff] }
 0x942   : > { %v1951_v23 = vmul.f32 %v2616_v2, %v1919_v19  ;;  %v1838_v0 = vpop.permute.xlu1 %1837  ;;  %v2631_v4 = vld [vmem:[%s2836_s25 + $0x60] sm:$0xff] }
 0x943   : > { %v1972_v22 = vmul.f32 %v2613_v7, %v1940_v60  ;;  %v1973_v62 = vmul.f32 %v2614_v17, %v1941_v28  ;;  %1982 = vst [vmem:[%s3656_s26] sm:$0xff] %v1950_v15  ;;  %v1920_v14 = vadd.f32 %v3646_v35, %v1838_v0  ;;  %v1921_v20 = vadd.f32 %v3648_v39, %v1838_v0  ;;  %v2632_v7 = vld [vmem:[%s2836_s25 + $0x68] sm:$0xff]  ;;  %v2633_v15 = vld [vmem:[%s2836_s25 + $0x80] sm:$0xff] }
 0x944   : > { %v1898_v1 = vpop.permute.xlu0 %1897  ;;  %1983 = vst [vmem:[%s3656_s26 + $0x8] sm:$0xff] %v1951_v23  ;;  %v2634_v23 = vld [vmem:[%s2836_s25 + $0x88] sm:$0xff] }
 0x945   : > { %2004 = vst [vmem:[%s3656_s26 + $0xb0] sm:$0xff] %v1972_v22  ;;  %2005 = vst [vmem:[%s3656_s26 + $0xb8] sm:$0xff] %v1973_v62  ;;  %v1944_v37 = vadd.f32 %v3646_v35, %v1898_v1  ;;  %v1945_v58 = vadd.f32 %v3648_v39, %v1898_v1  ;;  %v1952_v55 = vmul.f32 %v2619_v40, %v1920_v14  ;;  %v2635_v14 = vld [vmem:[%s2836_s25 + $0xa0] sm:$0xff] }
 0x946   : > { %v1953_v53 = vmul.f32 %v2620_v50, %v1921_v20  ;;  %v1843_v61 = vpop.permute.xlu1 %1842 }
 0x947   : > { %v1976_v38 = vmul.f32 %v2617_v46, %v1944_v37  ;;  %v1977_v52 = vmul.f32 %v2618_v21, %v1945_v58  ;;  %1984 = vst [vmem:[%s3656_s26 + $0x10] sm:$0xff] %v1952_v55  ;;  %v1922_v16 = vadd.f32 %v3646_v35, %v1843_v61  ;;  %v1923_v31 = vadd.f32 %v3648_v39, %v1843_v61  ;;  %v2636_v46 = vld [vmem:[%s2836_s25 + $0xa8] sm:$0xff]  ;;  %v2637_v55 = vld [vmem:[%s2836_s25 + $0xc0] sm:$0xff] }
 0x948   : > { %v1908_v49 = vpop.permute.xlu0 %1907  ;;  %1985 = vst [vmem:[%s3656_s26 + $0x18] sm:$0xff] %v1953_v53  ;;  %v2638_v53 = vld [vmem:[%s2836_s25 + $0xc8] sm:$0xff] }
 0x949   : > { %2008 = vst [vmem:[%s3656_s26 + $0xd0] sm:$0xff] %v1976_v38  ;;  %2009 = vst [vmem:[%s3656_s26 + $0xd8] sm:$0xff] %v1977_v52  ;;  %v1948_v32 = vadd.f32 %v3646_v35, %v1908_v49  ;;  %v1949_v13 = vadd.f32 %v3648_v39, %v1908_v49  ;;  %v1954_v44 = vmul.f32 %v2623_v25, %v1922_v16  ;;  %v2639_v16 = vld [vmem:[%s2836_s25 + $0xe0] sm:$0xff] }
 0x94a   : > { %v1955_v45 = vmul.f32 %v2624_v29, %v1923_v31  ;;  %v1848_v48 = vpop.permute.xlu1 %1847 }
 0x94b   : > { %v1980_v57 = vmul.f32 %v2621_v11, %v1948_v32  ;;  %v1981_v8 = vmul.f32 %v2622_v54, %v1949_v13  ;;  %1986 = vst [vmem:[%s3656_s26 + $0x20] sm:$0xff] %v1954_v44  ;;  %v1924_v56 = vadd.f32 %v3646_v35, %v1848_v48  ;;  %v1925_v36 = vadd.f32 %v3648_v39, %v1848_v48  ;;  %v2640_v11 = vld [vmem:[%s2836_s25 + $0xe8] sm:$0xff] }
 0x94c   : > { %1987 = vst [vmem:[%s3656_s26 + $0x28] sm:$0xff] %v1955_v45 }
 0x94d   : > { %2012 = vst [vmem:[%s3656_s26 + $0xf0] sm:$0xff] %v1980_v57  ;;  %2013 = vst [vmem:[%s3656_s26 + $0xf8] sm:$0xff] %v1981_v8  ;;  %v1956_v51 = vmul.f32 %v2625_v10, %v1924_v56  ;;  %v1957_v47 = vmul.f32 %v2626_v43, %v1925_v36 }
 0x94e   : > { %v1853_v33 = vpop.permute.xlu1 %1852 }
 0x94f   : > { %1988 = vst [vmem:[%s3656_s26 + $0x30] sm:$0xff] %v1956_v51  ;;  %1989 = vst [vmem:[%s3656_s26 + $0x38] sm:$0xff] %v1957_v47  ;;  %v1926_v27 = vadd.f32 %v3646_v35, %v1853_v33  ;;  %v1927_v3 = vadd.f32 %v3648_v39, %v1853_v33 }
 0x951   : > { %v1958_v9 = vmul.f32 %v2627_v59, %v1926_v27  ;;  %v1959_v63 = vmul.f32 %v2628_v5, %v1927_v3 }
 0x952   : > { %v1858_v12 = vpop.permute.xlu1 %1857 }
 0x953   : > { %1990 = vst [vmem:[%s3656_s26 + $0x40] sm:$0xff] %v1958_v9  ;;  %1991 = vst [vmem:[%s3656_s26 + $0x48] sm:$0xff] %v1959_v63  ;;  %v1928_v26 = vadd.f32 %v3646_v35, %v1858_v12  ;;  %v1929_v24 = vadd.f32 %v3648_v39, %v1858_v12 }
 0x955   : > { %v1960_v30 = vmul.f32 %v2629_v42, %v1928_v26  ;;  %v1961_v18 = vmul.f32 %v2630_v6, %v1929_v24 }
 0x956   : > { %v1863_v34 = vpop.permute.xlu1 %1862 }
 0x957   : > { %1992 = vst [vmem:[%s3656_s26 + $0x50] sm:$0xff] %v1960_v30  ;;  %1993 = vst [vmem:[%s3656_s26 + $0x58] sm:$0xff] %v1961_v18  ;;  %v1930_v60 = vadd.f32 %v3646_v35, %v1863_v34  ;;  %v1931_v28 = vadd.f32 %v3648_v39, %v1863_v34 }
 0x959   : > { %v1962_v19 = vmul.f32 %v2631_v4, %v1930_v60  ;;  %v1963_v22 = vmul.f32 %v2632_v7, %v1931_v28 }
 0x95a   : > { %v1873_v17 = vpop.permute.xlu1 %1872 }
 0x95b   : > { %1994 = vst [vmem:[%s3656_s26 + $0x60] sm:$0xff] %v1962_v19  ;;  %1995 = vst [vmem:[%s3656_s26 + $0x68] sm:$0xff] %v1963_v22  ;;  %v1934_v62 = vadd.f32 %v3646_v35, %v1873_v17  ;;  %v1935_v41 = vadd.f32 %v3648_v39, %v1873_v17 }
 0x95d   : > { %v1966_v2 = vmul.f32 %v2633_v15, %v1934_v62  ;;  %v1967_v1 = vmul.f32 %v2634_v23, %v1935_v41 }
 0x95e   : > { %v1883_v0 = vpop.permute.xlu1 %1882 }
 0x95f   : > { %1998 = vst [vmem:[%s3656_s26 + $0x80] sm:$0xff] %v1966_v2  ;;  %1999 = vst [vmem:[%s3656_s26 + $0x88] sm:$0xff] %v1967_v1  ;;  %v1938_v37 = vadd.f32 %v3646_v35, %v1883_v0  ;;  %v1939_v58 = vadd.f32 %v3648_v39, %v1883_v0 }
 0x961   : > { %v1970_v20 = vmul.f32 %v2635_v14, %v1938_v37  ;;  %v1971_v38 = vmul.f32 %v2636_v46, %v1939_v58 }
 0x962   : > { %v1893_v21 = vpop.permute.xlu1 %1892 }
 0x963   : > { %2002 = vst [vmem:[%s3656_s26 + $0xa0] sm:$0xff] %v1970_v20  ;;  %2003 = vst [vmem:[%s3656_s26 + $0xa8] sm:$0xff] %v1971_v38  ;;  %v1942_v52 = vadd.f32 %v3646_v35, %v1893_v21  ;;  %v1943_v40 = vadd.f32 %v3648_v39, %v1893_v21 }
 0x965   : > { %v1974_v50 = vmul.f32 %v2637_v55, %v1942_v52  ;;  %v1975_v49 = vmul.f32 %v2638_v53, %v1943_v40 }
 0x966   : > { %v1903_v61 = vpop.permute.xlu1 %1902 }
 0x967   : > { %2006 = vst [vmem:[%s3656_s26 + $0xc0] sm:$0xff] %v1974_v50  ;;  %2007 = vst [vmem:[%s3656_s26 + $0xc8] sm:$0xff] %v1975_v49  ;;  %v1946_v32 = vadd.f32 %v3646_v35, %v1903_v61  ;;  %v1947_v13 = vadd.f32 %v3648_v39, %v1903_v61 }
 0x969   : > { %v1978_v31 = vmul.f32 %v2639_v16, %v1946_v32  ;;  %v1979_v57 = vmul.f32 %v2640_v11, %v1947_v13 }
 0x96b   : > { %2010 = vst [vmem:[%s3656_s26 + $0xe0] sm:$0xff] %v1978_v31  ;;  %2011 = vst [vmem:[%s3656_s26 + $0xe8] sm:$0xff] %v1979_v57 }
 0x96c   : > { %2654 = shalt.err (!%p2651_p3)
}
 0x96d   : > { %s2655_s25 = scalar_lea.hbm %s3751_s17, 4096  ;;  %s2659_s14 = scalar_lea.hbm %s3814_s13, 8192 }
 0x96e   : > { %p2656_p4 = scmp.ne.s32.totalorder %s3751_s17, %s2655_s25  ;;  %p2660_p9 = scmp.lt.s32.totalorder %s3751_s17, %s3814_s13 }
 0x96f   : > { %p2661_p10 = scmp.lt.s32.totalorder %s2659_s14, %s2655_s25 }
 0x970   : > { %p2657_p7 = pnand %p2656_p4, %p2821_p5 }
 0x971   : > { %p2662_p11 = por %p2661_p10, %p2660_p9 }
 0x972   : > { %p2658_p8 = pneg %p2657_p7 }
 0x974   : > { %p2663_p12 = pnand %p2662_p11, %p2658_p8 }
 0x976   : > { %2666 = shalt.err (!%p2663_p12)
}
 0x977   : > { %s2708_s21 = smov 256   ;;  %s2709_s24 = smov 16  }
 0x978   : > { %2463 = dma.vmem_to_hbm [thread:$0]  (%p2821_p5), %s3753_s18, 4096, %s3751_s17, %s3761_s4, %s2708_s21, %s2708_s21, %s2709_s24  }
 0x979 PF: > { %p2469_p13 = scmp.ge.s32.totalorder %s2701_s30, 2  ;;  %s2043_s0 = sand.u32 1, %s2689_s27  }
 0x97a   : > { %s2044_s25 = scalar_lea.sflag [#allocation4], %s2043_s0 }
 0x97b   : > { %p2466_p0 = pnand %p2469_p13, %p2825_p6 }
 0x97d   : > { %p2467_p1 = pneg %p2466_p0 }
 0x97f   : > { %2684 = dma.done.wait (%p2467_p1), %s2044_s25, 4096  }
 0x980   : > { %2686 = vsyncadd (%p2467_p1), %s2044_s25, 4294963200  ;;  %s3847_s23 = sld [smem:[#allocation6_spill]]  ;;  %p25_p2 = scmp.ge.s32.totalorder %s2808_s15, 4  }
 0x981   : > { %s3848_s27 = smov %s2693_s28  ;;  %s3849_s28 = smov %s2697_s29 }
 0x982   : > { %s3851_s30 = smov %s2808_s15  ;;  %27 = sbr.rel (!%p25_p2) target bundleno = 6 (0x6), region = 107 }
 0x986   : > { %s3850_s29 = smov %s3847_s23 }
 0x987   :  { %2049 = vsyncpa [#allocation4], 1 }
 0x988   :  { %2051 = vsyncpa [#allocation4 + $0x1], 1 }

</bundles_post_ra>
